<compile_context>
chip_gen: v5e
topology: v5e:2x2
jax: 0.10.0
libtpu: 0.0.40
codegen_flags: <defaults>
</compile_context>

<pallas_src>
import functools

import jax
import jax.numpy as jnp
from jax.experimental import pallas as pl
from jax.experimental.pallas import tpu as pltpu

IN_FEATURES = 32 * 256     # 8192  (fixed by the module: fc1 in_features)
HIDDEN = 128               # fc1 out_features
OUT = 2                    # fc2 out_features
MAX_BN = 256               # batch rows per grid step (sublane-aligned)


def _kernel(x_ref, w1_ref, b1_ref, w2_ref, b2_ref, out_ref):
    # x_ref:   (BN, 8192)        activation tile (f32 or bf16)
    # w1_ref:  (8192, 128) bf16  full fc1 weight, VMEM-resident (constant idx)
    # b1_ref:  (1, 128)    f32
    # w2_ref:  (128, 2)    f32
    # b2_ref:  (1, 2)      f32
    # out_ref: (BN, 2)     f32   final logits
    x_bf16 = x_ref[...].astype(jnp.bfloat16)          # no-op if already bf16
    h = jnp.dot(x_bf16, w1_ref[...],
                preferred_element_type=jnp.float32)    # (BN, 128) f32 on MXU
    h = jnp.maximum(h + b1_ref[...], 0.0)              # bias + relu on VPU
    out_ref[...] = (jnp.dot(h, w2_ref[...],
                            preferred_element_type=jnp.float32)
                    + b2_ref[...]).astype(out_ref.dtype)


def _round_up(a, b):
    return (a + b - 1) // b * b


def prepare_params(w1, b1, w2, b2):
    """One-time parameter prep (do this at load time, NOT per forward call).

    w1: (128, 8192) PyTorch nn.Linear layout (out, in)  -> (8192, 128) bf16
    b1: (128,)                                           -> (1, 128)   f32
    w2: (2, 128)                                         -> (128, 2)   f32
    b2: (2,)                                             -> (1, 2)     f32
    """
    w1t = jnp.asarray(w1, jnp.float32).T.astype(jnp.bfloat16)
    b1r = jnp.asarray(b1, jnp.float32).reshape(1, HIDDEN)
    w2t = jnp.asarray(w2, jnp.float32).T
    b2r = jnp.asarray(b2, jnp.float32).reshape(1, OUT)
    return w1t, b1r, w2t, b2r


@jax.jit
def cnn_dc_forward(x, w1t, b1r, w2t, b2r, alpha=1.0):
    """Forward pass of CNN_DC with pre-prepared params (see prepare_params).

    x: any shape flattening to (N, 32*256), f32 or bf16.
    alpha: gradient-reversal strength — forward is identity, unused here.
    """
    del alpha  # grad_reverse only flips gradients; forward pass is identity.

    xf = x.reshape(-1, IN_FEATURES)
    N = xf.shape[0]

    BN = min(MAX_BN, _round_up(max(N, 1), 8))
    n_blocks = pl.cdiv(N, BN)
    N_pad = n_blocks * BN   # output rows; ragged input block handled by Pallas

    out = pl.pallas_call(
        _kernel,
        out_shape=jax.ShapeDtypeStruct((N_pad, OUT), jnp.float32),
        grid_spec=pltpu.PrefetchScalarGridSpec(
            num_scalar_prefetch=0,
            grid=(n_blocks,),
            in_specs=[
                pl.BlockSpec((BN, IN_FEATURES), lambda i: (i, 0)),       # x
                pl.BlockSpec((IN_FEATURES, HIDDEN), lambda i: (0, 0)),   # w1 (resident)
                pl.BlockSpec((1, HIDDEN), lambda i: (0, 0)),             # b1
                pl.BlockSpec((HIDDEN, OUT), lambda i: (0, 0)),           # w2
                pl.BlockSpec((1, OUT), lambda i: (0, 0)),                # b2
            ],
            out_specs=pl.BlockSpec((BN, OUT), lambda i: (i, 0)),
        ),
        compiler_params=pltpu.CompilerParams(
            dimension_semantics=("parallel",),
            vmem_limit_bytes=32 * 1024 * 1024),
    )(xf, w1t, b1r, w2t, b2r)

    return out[:N]


def _ref_forward(x, w1, b1, w2, b2):
    """Pure-JAX f32 reference matching the PyTorch forward exactly."""
    xf = x.reshape(-1, IN_FEATURES).astype(jnp.float32)
    h = jnp.maximum(
        jax.lax.dot(xf, w1.T, precision=jax.lax.Precision.HIGHEST) + b1, 0.0)
    return jax.lax.dot(h, w2.T, precision=jax.lax.Precision.HIGHEST) + b2


if __name__ == "__main__":
    key = jax.random.PRNGKey(0)
    kx, k1, kb1, k2, kb2 = jax.random.split(key, 5)

    N = 2
    # Feature-map sized input consistent with the module: view(-1, 32*256).
    x = jax.random.normal(kx, (N, 32, 256), jnp.float32)

    # Deterministic synthetic parameters (PyTorch nn.Linear layout: out, in).
    w1 = 0.02 * jax.random.normal(k1, (HIDDEN, IN_FEATURES), jnp.float32)
    b1 = 0.02 * jax.random.normal(kb1, (HIDDEN,), jnp.float32)
    w2 = 0.10 * jax.random.normal(k2, (OUT, HIDDEN), jnp.float32)
    b2 = 0.10 * jax.random.normal(kb2, (OUT,), jnp.float32)

    # One-time parameter prep (transpose + bf16 cast hoisted out of the call).
    params = prepare_params(w1, b1, w2, b2)
    params = jax.tree_util.tree_map(jax.block_until_ready, params)

    y = cnn_dc_forward(x, *params, alpha=1.0)
    jax.block_until_ready(y)

    y_ref = _ref_forward(x, w1, b1, w2, b2)
    assert y.shape == (N, OUT), y.shape
    err = float(jnp.max(jnp.abs(y - y_ref)))
    # Tolerance loosened vs f32 because x/w1 hit the MXU in bf16 (f32 accum).
    assert jnp.allclose(y, y_ref, atol=3e-2, rtol=3e-2), \
        f"mismatch, max err {err}"

    print("KERNEL_OK")
</pallas_src>

<mosaic_0001>
module attributes {stable_mosaic.version = 11 : i64} {
  func.func @_kernel(%arg0: i32, %arg1: memref<8x8192xf32, #tpu.memory_space<vmem>>, %arg2: memref<8192x128xbf16, #tpu.memory_space<vmem>>, %arg3: memref<1x128xf32, #tpu.memory_space<vmem>>, %arg4: memref<128x2xf32, #tpu.memory_space<vmem>>, %arg5: memref<1x2xf32, #tpu.memory_space<vmem>>, %arg6: memref<8x2xf32, #tpu.memory_space<vmem>>) attributes {dimension_semantics = [#tpu.dimension_semantics<parallel>], iteration_bounds = array<i64: 1>, scalar_prefetch = 0 : i64, scratch_operands = 0 : i64, tpu.core_type = #tpu.core_type<tc>, window_params = [{transform_indices = @transform_0, window_bounds = array<i64: 8, 8192>}, {pipeline_mode = #tpu.pipeline_mode<synchronous>, transform_indices = @transform_1, window_bounds = array<i64: 8192, 128>}, {pipeline_mode = #tpu.pipeline_mode<synchronous>, transform_indices = @transform_2, window_bounds = array<i64: 1, 128>}, {pipeline_mode = #tpu.pipeline_mode<synchronous>, transform_indices = @transform_3, window_bounds = array<i64: 128, 2>}, {pipeline_mode = #tpu.pipeline_mode<synchronous>, transform_indices = @transform_4, window_bounds = array<i64: 1, 2>}, {transform_indices = @transform_5, window_bounds = array<i64: 8, 2>}]} {
    %c0 = arith.constant 0 : index
    %c0_0 = arith.constant 0 : index
    %0 = vector.load %arg1[%c0, %c0_0] : memref<8x8192xf32, #tpu.memory_space<vmem>>, vector<8x8192xf32>
    %1 = arith.truncf %0 : vector<8x8192xf32> to vector<8x8192xbf16>
    %c0_1 = arith.constant 0 : index
    %c0_2 = arith.constant 0 : index
    %2 = vector.load %arg2[%c0_1, %c0_2] : memref<8192x128xbf16, #tpu.memory_space<vmem>>, vector<8192x128xbf16>
    %cst = arith.constant dense<0.000000e+00> : vector<8x128xf32>
    %3 = tpu.matmul %1, %2, %cst {dimension_numbers = #tpu.dot_dimension_numbers<[1], [0], [0], [1], [0, 0, 1, 1], [], []>} : vector<8x8192xbf16>, vector<8192x128xbf16>, vector<8x128xf32> -> vector<8x128xf32>
    %c0_3 = arith.constant 0 : index
    %c0_4 = arith.constant 0 : index
    %4 = vector.load %arg3[%c0_3, %c0_4] : memref<1x128xf32, #tpu.memory_space<vmem>>, vector<1x128xf32>
    %5 = vector.broadcast %4 : vector<1x128xf32> to vector<8x128xf32>
    %6 = arith.addf %3, %5 : vector<8x128xf32>
    %cst_5 = arith.constant 0.000000e+00 : f32
    %7 = vector.broadcast %cst_5 : f32 to vector<8x128xf32>
    %8 = arith.maximumf %6, %7 : vector<8x128xf32>
    %c0_6 = arith.constant 0 : index
    %c0_7 = arith.constant 0 : index
    %9 = vector.load %arg4[%c0_6, %c0_7] : memref<128x2xf32, #tpu.memory_space<vmem>>, vector<128x2xf32>
    %cst_8 = arith.constant dense<0.000000e+00> : vector<8x2xf32>
    %10 = tpu.matmul %8, %9, %cst_8 {dimension_numbers = #tpu.dot_dimension_numbers<[1], [0], [0], [1], [0, 0, 1, 1], [], []>} : vector<8x128xf32>, vector<128x2xf32>, vector<8x2xf32> -> vector<8x2xf32>
    %c0_9 = arith.constant 0 : index
    %c0_10 = arith.constant 0 : index
    %11 = vector.load %arg5[%c0_9, %c0_10] : memref<1x2xf32, #tpu.memory_space<vmem>>, vector<1x2xf32>
    %12 = vector.broadcast %11 : vector<1x2xf32> to vector<8x2xf32>
    %13 = arith.addf %10, %12 : vector<8x2xf32>
    %c0_11 = arith.constant 0 : index
    %c0_12 = arith.constant 0 : index
    %14 = vector.load %arg6[%c0_11, %c0_12] : memref<8x2xf32, #tpu.memory_space<vmem>>, vector<8x2xf32>
    tpu.vector_store %arg6[%c0_11, %c0_12], %13 {strides = array<i32>} : memref<8x2xf32, #tpu.memory_space<vmem>>, vector<8x2xf32>,
    return
  }
  func.func @transform_0(%arg0: i32) -> (i32, i32) {
    %c0_i32 = arith.constant 0 : i32
    %c0_i32_0 = arith.constant 0 : i32
    return %arg0, %c0_i32 : i32, i32
  }
  func.func @transform_1(%arg0: i32) -> (i32, i32) {
    %c0_i32 = arith.constant 0 : i32
    %c0_i32_0 = arith.constant 0 : i32
    %c0_i32_1 = arith.constant 0 : i32
    return %c0_i32, %c0_i32_0 : i32, i32
  }
  func.func @transform_2(%arg0: i32) -> (i32, i32) {
    %c0_i32 = arith.constant 0 : i32
    %c0_i32_0 = arith.constant 0 : i32
    %c0_i32_1 = arith.constant 0 : i32
    return %c0_i32, %c0_i32_0 : i32, i32
  }
  func.func @transform_3(%arg0: i32) -> (i32, i32) {
    %c0_i32 = arith.constant 0 : i32
    %c0_i32_0 = arith.constant 0 : i32
    %c0_i32_1 = arith.constant 0 : i32
    return %c0_i32, %c0_i32_0 : i32, i32
  }
  func.func @transform_4(%arg0: i32) -> (i32, i32) {
    %c0_i32 = arith.constant 0 : i32
    %c0_i32_0 = arith.constant 0 : i32
    %c0_i32_1 = arith.constant 0 : i32
    return %c0_i32, %c0_i32_0 : i32, i32
  }
  func.func @transform_5(%arg0: i32) -> (i32, i32) {
    %c0_i32 = arith.constant 0 : i32
    %c0_i32_0 = arith.constant 0 : i32
    return %arg0, %c0_i32 : i32, i32
  }
}

</mosaic_0001>

<bundles_post_ra>
// kernel: cnn_dc_forward.1
= control target key start
LH: loop header
LB: loop body
LE: loop exit
PB: predicated region body
PF: predicated region fallthrough
CT: control target
= control target key end

     0   :  { %10 = vsyncpa [#allocation3], 0  ;;  %s8395_s0 = inlined_call_operand.vmem [shape: f32[2,8192], index: 0, kind: input, shape index: {}]   ;;  %s8396_s1 = inlined_call_operand.hbm [shape: bf16[8192,128], index: 1, kind: input, shape index: {}]   ;;  %s8397_s2 = inlined_call_operand.hbm [shape: f32[1,128], index: 2, kind: input, shape index: {}]   ;;  %s8398_s3 = inlined_call_operand.vmem [shape: f32[128,2], index: 3, kind: input, shape index: {}]   ;;  %s8399_s4 = inlined_call_operand.hbm [shape: f32[1,2], index: 4, kind: input, shape index: {}]   ;;  %s8400_s5 = inlined_call_operand.vmem [shape: f32[8,2], index: 5, kind: output, shape index: {}]  }
   0x1   :  { %11 = vsyncpa [#allocation5], 0  ;;  %s32_s20 = sshll.u32 %s8397_s2, 4  ;;  %s8078_s21 = smov [#allocation4]   ;;  %s33_s20 = int_to_ptr.hbm [resolvable:$true] %s32_s20 }
   0x2   :  { %s34_s22 = sshll.u32 %s8078_s21, 4  ;;  %s18_s25 = sshll.u32 %s8396_s1, 4  ;;  %s35_s22 = int_to_ptr.vmem [resolvable:$true] %s34_s22  ;;  %s19_s25 = int_to_ptr.hbm [resolvable:$true] %s18_s25 }
   0x3   :  { %37 = dma.hbm_to_vmem [thread:$0]  %s33_s20, 16, %s35_s22, [#allocation5]  }
   0x4   :  { %s8079_s26 = smov [#allocation2]   ;;  %s8080_s28 = smov 64  }
   0x5   :  { %s20_s27 = sshll.u32 %s8079_s26, 4  ;;  %s8081_s29 = smov 4   ;;  %s21_s27 = int_to_ptr.vmem [resolvable:$true] %s20_s27 }
   0x6   :  { %26 = dma.hbm_to_vmem [thread:$0]  %s19_s25, 65536, %s21_s27, [#allocation3], %s8080_s28, %s8080_s28, %s8081_s29  }
   0x7   :  { %s45_s2 = sshll.u32 %s8399_s4, 4  ;;  %s8082_s7 = smov [#allocation6]   ;;  %s46_s2 = int_to_ptr.hbm [resolvable:$true] %s45_s2 }
   0x8   :  { %s47_s8 = sshll.u32 %s8082_s7, 4  ;;  %s48_s8 = int_to_ptr.vmem [resolvable:$true] %s47_s8 }
   0x9   :  { %50 = dma.hbm_to_vmem [thread:$0]  %s46_s2, 16, %s48_s8, [#allocation5]  }
   0xa   :  { %8074 = dma.done.wait [#allocation3], 65536  }
   0xb   :  { %8075 = vsyncadd [#allocation3], 4294901760 }
   0xc   :  { %8076 = dma.done.wait [#allocation5], 32  }
   0xd   :  { %8077 = vsyncadd [#allocation5], 4294967264  ;;  %v7490_v0 = vld [vmem:[#allocation2 + $0x38] sm:$0xff]  ;;  %v7489_v4 = vld [vmem:[#allocation2 + $0x30] sm:$0xff]  ;;  %vm5427_vm0 = vcmask 15360  }
   0xe   :  { %v7498_v1 = vld [vmem:[#allocation2 + $0x78] sm:$0xff]  ;;  %4554 = vmatpush.bf16.msra.mxu0 %v7490_v0  ;;  %v7497_v5 = vld [vmem:[#allocation2 + $0x70] sm:$0xff]  ;;  %v7488_v8 = vld [vmem:[#allocation2 + $0x28] sm:$0xff] }
   0xf   :  { %v7506_v2 = vld [vmem:[#allocation2 + $0xb8] sm:$0xff]  ;;  %4567 = vmatpush.bf16.msra.mxu1 %v7498_v1  ;;  %v7505_v6 = vld [vmem:[#allocation2 + $0xb0] sm:$0xff]  ;;  %v7496_v9 = vld [vmem:[#allocation2 + $0x68] sm:$0xff] }
  0x10   :  { %v7514_v3 = vld [vmem:[#allocation2 + $0xf8] sm:$0xff]  ;;  %4580 = vmatpush.bf16.msra.mxu2 %v7506_v2  ;;  %v7513_v7 = vld [vmem:[#allocation2 + $0xf0] sm:$0xff]  ;;  %v7504_v10 = vld [vmem:[#allocation2 + $0xa8] sm:$0xff] }
  0x11   :  { %4593 = vmatpush.bf16.msra.mxu3 %v7514_v3  ;;  %v7512_v11 = vld [vmem:[#allocation2 + $0xe8] sm:$0xff]  ;;  %v7487_v12 = vld [vmem:[#allocation2 + $0x20] sm:$0xff]  ;;  %v7486_v16 = vld [vmem:[#allocation2 + $0x18] sm:$0xff] }
  0x12   :  { %4555 = vmatpush.bf16.msra.mxu0 %v7489_v4  ;;  %v7495_v13 = vld [vmem:[#allocation2 + $0x60] sm:$0xff]  ;;  %v7494_v17 = vld [vmem:[#allocation2 + $0x58] sm:$0xff]  ;;  %v7485_v20 = vld [vmem:[#allocation2 + $0x10] sm:$0xff] }
  0x13   :  { %4568 = vmatpush.bf16.msra.mxu1 %v7497_v5  ;;  %v7503_v14 = vld [vmem:[#allocation2 + $0xa0] sm:$0xff]  ;;  %v7502_v18 = vld [vmem:[#allocation2 + $0x98] sm:$0xff]  ;;  %v7493_v21 = vld [vmem:[#allocation2 + $0x50] sm:$0xff] }
  0x14   :  { %4581 = vmatpush.bf16.msra.mxu2 %v7505_v6  ;;  %v7511_v15 = vld [vmem:[#allocation2 + $0xe0] sm:$0xff]  ;;  %v7510_v19 = vld [vmem:[#allocation2 + $0xd8] sm:$0xff]  ;;  %v7501_v26 = vld [vmem:[#allocation2 + $0x90] sm:$0xff] }
  0x15   :  { %4594 = vmatpush.bf16.msra.mxu3 %v7513_v7  ;;  %v63_v22 = vld [vmem:[%s8395_s0] sm:$0xff]  ;;  %v7509_v27 = vld [vmem:[#allocation2 + $0xd0] sm:$0xff]  ;;  %v7484_v28 = vld [vmem:[#allocation2 + $0x8] sm:$0xff] }
  0x16   :  { %4556 = vmatpush.bf16.msra.mxu0 %v7488_v8  ;;  %v79_v23 = vld [vmem:[%s8395_s0 + $0x80] sm:$0xff]  ;;  %191 = vst [vmem:[#allocation1] ss:$4 sm:$0xff] %v63_v22  ;;  %v7492_v29 = vld [vmem:[#allocation2 + $0x48] sm:$0xff]  ;;  %v7483_v32 = vld [vmem:[#allocation2] sm:$0xff] }
  0x17   :  { %4569 = vmatpush.bf16.msra.mxu1 %v7496_v9  ;;  %v95_v24 = vld [vmem:[%s8395_s0 + $0x100] sm:$0xff]  ;;  %193 = vst [vmem:[#allocation1 + $0x1] ss:$4 sm:$0xff] %v79_v23  ;;  %v7500_v30 = vld [vmem:[#allocation2 + $0x88] sm:$0xff]  ;;  %v7491_v33 = vld [vmem:[#allocation2 + $0x40] sm:$0xff] }
  0x18   :  { %4582 = vmatpush.bf16.msra.mxu2 %v7504_v10  ;;  %v111_v25 = vld [vmem:[%s8395_s0 + $0x180] sm:$0xff]  ;;  %195 = vst [vmem:[#allocation1 + $0x2] ss:$4 sm:$0xff] %v95_v24  ;;  %v7508_v31 = vld [vmem:[#allocation2 + $0xc8] sm:$0xff]  ;;  %v7499_v34 = vld [vmem:[#allocation2 + $0x80] sm:$0xff] }
  0x19   :  { %4595 = vmatpush.bf16.msra.mxu3 %v7512_v11  ;;  %197 = vst [vmem:[#allocation1 + $0x3] ss:$4 sm:$0xff] %v111_v25  ;;  %v7507_v35 = vld [vmem:[#allocation2 + $0xc0] sm:$0xff]  ;;  %v7522_v36 = vld [vmem:[#allocation2 + $0x138] sm:$0xff]  ;;  %v7521_v46 = vld [vmem:[#allocation2 + $0x130] sm:$0xff] }
  0x1a   :  { %4557 = vmatpush.bf16.msra.mxu0 %v7487_v12  ;;  %v7530_v37 = vld [vmem:[#allocation2 + $0x178] sm:$0xff]  ;;  %v7529_v47 = vld [vmem:[#allocation2 + $0x170] sm:$0xff]  ;;  %v64_v50 = vld [vmem:[%s8395_s0 + $0x8] sm:$0xff] }
  0x1b   :  { %4570 = vmatpush.bf16.msra.mxu1 %v7495_v13  ;;  %v7538_v38 = vld [vmem:[#allocation2 + $0x1b8] sm:$0xff]  ;;  %v80_v51 = vld [vmem:[%s8395_s0 + $0x88] sm:$0xff]  ;;  %199 = vst [vmem:[#allocation1 + $0x20] ss:$4 sm:$0xff] %v64_v50  ;;  %v7537_v54 = vld [vmem:[#allocation2 + $0x1b0] sm:$0xff] }
  0x1c   :  { %4583 = vmatpush.bf16.msra.mxu2 %v7503_v14  ;;  %v7546_v39 = vld [vmem:[#allocation2 + $0x1f8] sm:$0xff]  ;;  %v96_v52 = vld [vmem:[%s8395_s0 + $0x108] sm:$0xff]  ;;  %v7545_v55 = vld [vmem:[#allocation2 + $0x1f0] sm:$0xff]  ;;  %201 = vst [vmem:[#allocation1 + $0x21] ss:$4 sm:$0xff] %v80_v51 }
  0x1d   :  { %4596 = vmatpush.bf16.msra.mxu3 %v7511_v15  ;;  %v112_v53 = vld [vmem:[%s8395_s0 + $0x188] sm:$0xff]  ;;  %203 = vst [vmem:[#allocation1 + $0x22] ss:$4 sm:$0xff] %v96_v52  ;;  %v7520_v56 = vld [vmem:[#allocation2 + $0x128] sm:$0xff]  ;;  %v7518_v0 = vld [vmem:[#allocation2 + $0x118] sm:$0xff] }
  0x1e   :  { %4558 = vmatpush.bf16.msra.mxu0 %v7486_v16  ;;  %205 = vst [vmem:[#allocation1 + $0x23] ss:$4 sm:$0xff] %v112_v53  ;;  %v7528_v57 = vld [vmem:[#allocation2 + $0x168] sm:$0xff]  ;;  %v7519_v60 = vld [vmem:[#allocation2 + $0x120] sm:$0xff]  ;;  %v7526_v1 = vld [vmem:[#allocation2 + $0x158] sm:$0xff] }
  0x1f   :  { %4571 = vmatpush.bf16.msra.mxu1 %v7494_v17  ;;  %v7536_v58 = vld [vmem:[#allocation2 + $0x1a8] sm:$0xff]  ;;  %v7527_v61 = vld [vmem:[#allocation2 + $0x160] sm:$0xff]  ;;  %v7534_v2 = vld [vmem:[#allocation2 + $0x198] sm:$0xff] }
  0x20   :  { %4584 = vmatpush.bf16.msra.mxu2 %v7502_v18  ;;  %v208_v40 = vld.sshfl [vmem:[#allocation1 + $0x10] sm:$0xff pattern:$0x73625140]  ;;  %v206_v41 = vld.sshfl [vmem:[#allocation1] sm:$0xff pattern:$0x73625140] }
  0x21   :  { %4597 = vmatpush.bf16.msra.mxu3 %v7510_v19  ;;  %v209_v42 = vld.sshfl [vmem:[#allocation1 + $0x18] sm:$0xff pattern:$0x73625140]  ;;  %v207_v43 = vld.sshfl [vmem:[#allocation1 + $0x8] sm:$0xff pattern:$0x73625140]  ;;  %v392_v44 = vpack.c.bf16 %v208_v40, %v208_v40  ;;  %v390_v45 = vpack.c.bf16 %v206_v41, %v206_v41 }
  0x22   :  { %4559 = vmatpush.bf16.msra.mxu0 %v7485_v20  ;;  %v393_v48 = vpack.c.bf16 %v209_v42, %v209_v42  ;;  %v391_v49 = vpack.c.bf16 %v207_v43, %v207_v43  ;;  %v7544_v59 = vld [vmem:[#allocation2 + $0x1e8] sm:$0xff]  ;;  %v7535_v62 = vld [vmem:[#allocation2 + $0x1a0] sm:$0xff]  ;;  %v7542_v3 = vld [vmem:[#allocation2 + $0x1d8] sm:$0xff] }
  0x23   :  { %4572 = vmatpush.bf16.msra.mxu1 %v7493_v21  ;;  %v7543_v63 = vld [vmem:[#allocation2 + $0x1e0] sm:$0xff]  ;;  %v7517_v4 = vld [vmem:[#allocation2 + $0x110] sm:$0xff]  ;;  %v7516_v8 = vld [vmem:[#allocation2 + $0x108] sm:$0xff] }
  0x24   :  { %4585 = vmatpush.bf16.msra.mxu2 %v7501_v26  ;;  %v7525_v5 = vld [vmem:[#allocation2 + $0x150] sm:$0xff]  ;;  %v7524_v9 = vld [vmem:[#allocation2 + $0x148] sm:$0xff]  ;;  %v7515_v16 = vld [vmem:[#allocation2 + $0x100] sm:$0xff] }
  0x25   :  { %4598 = vmatpush.bf16.msra.mxu3 %v7509_v27  ;;  %v7533_v6 = vld [vmem:[#allocation2 + $0x190] sm:$0xff]  ;;  %v65_v10 = vld [vmem:[%s8395_s0 + $0x10] sm:$0xff]  ;;  %v7523_v17 = vld [vmem:[#allocation2 + $0x140] sm:$0xff] }
  0x26   :  { %4560 = vmatpush.bf16.msra.mxu0 %v7484_v28  ;;  %v7541_v7 = vld [vmem:[#allocation2 + $0x1d0] sm:$0xff]  ;;  %v81_v11 = vld [vmem:[%s8395_s0 + $0x90] sm:$0xff]  ;;  %214 = vst [vmem:[#allocation1] ss:$4 sm:$0xff] %v65_v10  ;;  %v7531_v18 = vld [vmem:[#allocation2 + $0x180] sm:$0xff] }
  0x27   :  { %4573 = vmatpush.bf16.msra.mxu1 %v7492_v29  ;;  %v97_v12 = vld [vmem:[%s8395_s0 + $0x110] sm:$0xff]  ;;  %215 = vst [vmem:[#allocation1 + $0x1] ss:$4 sm:$0xff] %v81_v11  ;;  %v7539_v19 = vld [vmem:[#allocation2 + $0x1c0] sm:$0xff]  ;;  %v7554_v20 = vld [vmem:[#allocation2 + $0x238] sm:$0xff] }
  0x28   :  { %4586 = vmatpush.bf16.msra.mxu2 %v7500_v30  ;;  %v7532_v13 = vld [vmem:[#allocation2 + $0x188] sm:$0xff]  ;;  %216 = vst [vmem:[#allocation1 + $0x2] ss:$4 sm:$0xff] %v97_v12  ;;  %v7562_v21 = vld [vmem:[#allocation2 + $0x278] sm:$0xff]  ;;  %v7551_v40 = vld [vmem:[#allocation2 + $0x220] sm:$0xff] }
  0x29   :  { %4599 = vmatpush.bf16.msra.mxu3 %v7508_v31  ;;  %v7540_v14 = vld [vmem:[#allocation2 + $0x1c8] sm:$0xff]  ;;  %v210_v23 = vld.sshfl [vmem:[#allocation1 + $0x20] sm:$0xff pattern:$0x73625140]  ;;  %v7559_v41 = vld [vmem:[#allocation2 + $0x260] sm:$0xff] }
  0x2a   :  { %4561 = vmatpush.bf16.msra.mxu0 %v7483_v32  ;;  %v113_v15 = vld [vmem:[%s8395_s0 + $0x190] sm:$0xff]  ;;  %v213_v24 = vld.sshfl [vmem:[#allocation1 + $0x38] sm:$0xff pattern:$0x73625140]  ;;  %v7570_v26 = vld [vmem:[#allocation2 + $0x2b8] sm:$0xff]  ;;  %v394_v29 = vpack.c.bf16 %v210_v23, %v210_v23 }
  0x2b   :  { %4574 = vmatpush.bf16.msra.mxu1 %v7491_v33  ;;  %217 = vst [vmem:[#allocation1 + $0x3] ss:$4 sm:$0xff] %v113_v15  ;;  %v212_v22 = vld.sshfl [vmem:[#allocation1 + $0x30] sm:$0xff pattern:$0x73625140]  ;;  %v7578_v27 = vld [vmem:[#allocation2 + $0x2f8] sm:$0xff]  ;;  %v397_v30 = vpack.c.bf16 %v213_v24, %v213_v24 }
  0x2c   :  { %4587 = vmatpush.bf16.msra.mxu2 %v7499_v34  ;;  %v211_v25 = vld.sshfl [vmem:[#allocation1 + $0x28] sm:$0xff pattern:$0x73625140]  ;;  %v396_v28 = vpack.c.bf16 %v212_v22, %v212_v22  ;;  %v7553_v32 = vld [vmem:[#allocation2 + $0x230] sm:$0xff]  ;;  %v7548_v52 = vld [vmem:[#allocation2 + $0x208] sm:$0xff] }
  0x2d   :  { %4600 = vmatpush.bf16.msra.mxu3 %v7507_v35  ;;  %4562 = vmatmul.bf16.vlgmr.msra.gmra.mxu0 %v390_v45  ;;  %v395_v31 = vpack.c.bf16 %v211_v25, %v211_v25  ;;  %v7561_v33 = vld [vmem:[#allocation2 + $0x270] sm:$0xff]  ;;  %v7567_v42 = vld [vmem:[#allocation2 + $0x2a0] sm:$0xff]  ;;  %v7558_v45 = vld [vmem:[#allocation2 + $0x258] sm:$0xff] }
  0x2e   :  { %4606 = vmatpush.bf16.msrb.mxu0 %v7522_v36  ;;  %4575 = vmatmul.bf16.vlgmr.msra.gmra.mxu1 %v391_v49  ;;  %v7569_v34 = vld [vmem:[#allocation2 + $0x2b0] sm:$0xff]  ;;  %v7552_v36 = vld [vmem:[#allocation2 + $0x228] sm:$0xff]  ;;  %v7575_v43 = vld [vmem:[#allocation2 + $0x2e0] sm:$0xff] }
  0x2f   :  { %4619 = vmatpush.bf16.msrb.mxu1 %v7530_v37  ;;  %4588 = vmatmul.bf16.vlgmr.msra.gmra.mxu2 %v392_v44  ;;  %v7577_v35 = vld [vmem:[#allocation2 + $0x2f0] sm:$0xff]  ;;  %v7560_v37 = vld [vmem:[#allocation2 + $0x268] sm:$0xff]  ;;  %v7550_v44 = vld [vmem:[#allocation2 + $0x218] sm:$0xff] }
  0x30   :  { %4632 = vmatpush.bf16.msrb.mxu2 %v7538_v38  ;;  %4601 = vmatmul.bf16.vlgmr.msra.gmra.mxu3 %v393_v48  ;;  %v7568_v38 = vld [vmem:[#allocation2 + $0x2a8] sm:$0xff]  ;;  %v7549_v48 = vld [vmem:[#allocation2 + $0x210] sm:$0xff]  ;;  %v7599_v22 = vld [vmem:[#allocation2 + $0x3a0] sm:$0xff] }
  0x31   :  { %4645 = vmatpush.bf16.msrb.mxu3 %v7546_v39  ;;  %v7576_v39 = vld [vmem:[#allocation2 + $0x2e8] sm:$0xff]  ;;  %v7557_v49 = vld [vmem:[#allocation2 + $0x250] sm:$0xff]  ;;  %v7607_v23 = vld [vmem:[#allocation2 + $0x3e0] sm:$0xff] }
  0x32   :  { %4607 = vmatpush.bf16.msrb.mxu0 %v7521_v46  ;;  %v7566_v46 = vld [vmem:[#allocation2 + $0x298] sm:$0xff]  ;;  %v7565_v50 = vld [vmem:[#allocation2 + $0x290] sm:$0xff]  ;;  %v7556_v53 = vld [vmem:[#allocation2 + $0x248] sm:$0xff] }
  0x33   :  { %4620 = vmatpush.bf16.msrb.mxu1 %v7529_v47  ;;  %v7574_v47 = vld [vmem:[#allocation2 + $0x2d8] sm:$0xff]  ;;  %v7573_v51 = vld [vmem:[#allocation2 + $0x2d0] sm:$0xff] }
  0x34   :  { %4633 = vmatpush.bf16.msrb.mxu2 %v7537_v54  ;;  %v66_v54 = vld [vmem:[%s8395_s0 + $0x18] sm:$0xff]  ;;  %v7582_v24 = vld [vmem:[#allocation2 + $0x318] sm:$0xff] }
  0x35   :  { %4646 = vmatpush.bf16.msrb.mxu3 %v7545_v55  ;;  %v82_v55 = vld [vmem:[%s8395_s0 + $0x98] sm:$0xff]  ;;  %218 = vst [vmem:[#allocation1 + $0x20] ss:$4 sm:$0xff] %v66_v54  ;;  %v7590_v25 = vld [vmem:[#allocation2 + $0x358] sm:$0xff] }
  0x36   :  { %4608 = vmatpush.bf16.msrb.mxu0 %v7520_v56  ;;  %v98_v56 = vld [vmem:[%s8395_s0 + $0x118] sm:$0xff]  ;;  %219 = vst [vmem:[#allocation1 + $0x21] ss:$4 sm:$0xff] %v82_v55 }
  0x37   :  { %4621 = vmatpush.bf16.msrb.mxu1 %v7528_v57  ;;  %v7564_v57 = vld [vmem:[#allocation2 + $0x288] sm:$0xff]  ;;  %220 = vst [vmem:[#allocation1 + $0x22] ss:$4 sm:$0xff] %v98_v56  ;;  %v7585_v12 = vld [vmem:[#allocation2 + $0x330] sm:$0xff] }
  0x38   :  { %4634 = vmatpush.bf16.msrb.mxu2 %v7536_v58  ;;  %v7572_v58 = vld [vmem:[#allocation2 + $0x2c8] sm:$0xff]  ;;  %v7609_v15 = vld [vmem:[#allocation2 + $0x3f0] sm:$0xff] }
  0x39   :  { %4647 = vmatpush.bf16.msrb.mxu3 %v7544_v59  ;;  %v114_v59 = vld [vmem:[%s8395_s0 + $0x198] sm:$0xff] }
  0x3a   :  { %4609 = vmatpush.bf16.msrb.mxu0 %v7519_v60  ;;  %v7547_v60 = vld [vmem:[#allocation2 + $0x200] sm:$0xff]  ;;  %221 = vst [vmem:[#allocation1 + $0x23] ss:$4 sm:$0xff] %v114_v59  ;;  %v7617_v56 = vld [vmem:[#allocation2 + $0x430] sm:$0xff] }
  0x3b   :  { %4622 = vmatpush.bf16.msrb.mxu1 %v7527_v61  ;;  %v7555_v61 = vld [vmem:[#allocation2 + $0x240] sm:$0xff]  ;;  %v7641_v59 = vld [vmem:[#allocation2 + $0x4f0] sm:$0xff] }
  0x3c   :  { %4635 = vmatpush.bf16.msrb.mxu2 %v7535_v62  ;;  %v7563_v62 = vld [vmem:[#allocation2 + $0x280] sm:$0xff] }
  0x3d   :  { %4648 = vmatpush.bf16.msrb.mxu3 %v7543_v63  ;;  %v7571_v63 = vld [vmem:[#allocation2 + $0x2c0] sm:$0xff] }
  0x3e   :  { %4610 = vmatpush.bf16.msrb.mxu0 %v7518_v0  ;;  %v7586_v0 = vld [vmem:[#allocation2 + $0x338] sm:$0xff] }
  0x3f   :  { %4623 = vmatpush.bf16.msrb.mxu1 %v7526_v1  ;;  %v7594_v1 = vld [vmem:[#allocation2 + $0x378] sm:$0xff] }
  0x40   :  { %4636 = vmatpush.bf16.msrb.mxu2 %v7534_v2  ;;  %v222_v2 = vld.sshfl [vmem:[#allocation1] sm:$0xff pattern:$0x73625140] }
  0x41   :  { %4649 = vmatpush.bf16.msrb.mxu3 %v7542_v3  ;;  %v224_v3 = vld.sshfl [vmem:[#allocation1 + $0x10] sm:$0xff pattern:$0x73625140] }
  0x42   :  { %4611 = vmatpush.bf16.msrb.mxu0 %v7517_v4  ;;  %v223_v4 = vld.sshfl [vmem:[#allocation1 + $0x8] sm:$0xff pattern:$0x73625140] }
  0x43   :  { %4624 = vmatpush.bf16.msrb.mxu1 %v7525_v5  ;;  %v225_v5 = vld.sshfl [vmem:[#allocation1 + $0x18] sm:$0xff pattern:$0x73625140]  ;;  %v399_v10 = vpack.c.bf16 %v223_v4, %v223_v4  ;;  %v7614_v4 = vld [vmem:[#allocation2 + $0x418] sm:$0xff] }
  0x44   :  { %4637 = vmatpush.bf16.msrb.mxu2 %v7533_v6  ;;  %v7602_v6 = vld [vmem:[#allocation2 + $0x3b8] sm:$0xff]  ;;  %v401_v11 = vpack.c.bf16 %v225_v5, %v225_v5 }
  0x45   :  { %4650 = vmatpush.bf16.msrb.mxu3 %v7541_v7  ;;  %v7610_v7 = vld [vmem:[#allocation2 + $0x3f8] sm:$0xff] }
  0x46   :  { %4612 = vmatpush.bf16.msrb.mxu0 %v7516_v8  ;;  %v398_v8 = vpack.c.bf16 %v222_v2, %v222_v2  ;;  %v7631_v2 = vld [vmem:[#allocation2 + $0x4a0] sm:$0xff]  ;;  %v7622_v5 = vld [vmem:[#allocation2 + $0x458] sm:$0xff] }
  0x47   :  { %4625 = vmatpush.bf16.msrb.mxu1 %v7524_v9  ;;  %v400_v9 = vpack.c.bf16 %v224_v3, %v224_v3  ;;  %v7639_v3 = vld [vmem:[#allocation2 + $0x4e0] sm:$0xff] }
  0x48   :  { %4638 = vmatpush.bf16.msrb.mxu2 %v7532_v13  ;;  %v7593_v13 = vld [vmem:[#allocation2 + $0x370] sm:$0xff] }
  0x49   :  { %4651 = vmatpush.bf16.msrb.mxu3 %v7540_v14  ;;  %v7601_v14 = vld [vmem:[#allocation2 + $0x3b0] sm:$0xff] }
  0x4a   :  { %4613 = vmatpush.bf16.msrb.mxu0 %v7515_v16  ;;  %v7584_v16 = vld [vmem:[#allocation2 + $0x328] sm:$0xff] }
  0x4b   :  { %4626 = vmatpush.bf16.msrb.mxu1 %v7523_v17  ;;  %v7592_v17 = vld [vmem:[#allocation2 + $0x368] sm:$0xff] }
  0x4c   :  { %4639 = vmatpush.bf16.msrb.mxu2 %v7531_v18  ;;  %v7600_v18 = vld [vmem:[#allocation2 + $0x3a8] sm:$0xff] }
  0x4d   :  { %4652 = vmatpush.bf16.msrb.mxu3 %v7539_v19  ;;  %4614 = vmatmul.bf16.vlgmr.msrb.gmra.mxu0 %v394_v29  ;;  %v7608_v19 = vld [vmem:[#allocation2 + $0x3e8] sm:$0xff]  ;;  %v7589_v29 = vld [vmem:[#allocation2 + $0x350] sm:$0xff] }
  0x4e   :  { %4658 = vmatpush.bf16.msra.mxu0 %v7554_v20  ;;  %4627 = vmatmul.bf16.vlgmr.msrb.gmra.mxu1 %v395_v31  ;;  %v7583_v20 = vld [vmem:[#allocation2 + $0x320] sm:$0xff]  ;;  %v7605_v31 = vld [vmem:[#allocation2 + $0x3d0] sm:$0xff] }
  0x4f   :  { %4671 = vmatpush.bf16.msra.mxu1 %v7562_v21  ;;  %4640 = vmatmul.bf16.vlgmr.msrb.gmra.mxu2 %v396_v28  ;;  %v7591_v21 = vld [vmem:[#allocation2 + $0x360] sm:$0xff]  ;;  %v7581_v28 = vld [vmem:[#allocation2 + $0x310] sm:$0xff] }
  0x50   :  { %4684 = vmatpush.bf16.msra.mxu2 %v7570_v26  ;;  %4653 = vmatmul.bf16.vlgmr.msrb.gmra.mxu3 %v397_v30  ;;  %v7598_v26 = vld [vmem:[#allocation2 + $0x398] sm:$0xff]  ;;  %v7597_v30 = vld [vmem:[#allocation2 + $0x390] sm:$0xff] }
  0x51   :  { %4697 = vmatpush.bf16.msra.mxu3 %v7578_v27  ;;  %v7606_v27 = vld [vmem:[#allocation2 + $0x3d8] sm:$0xff] }
  0x52   :  { %4659 = vmatpush.bf16.msra.mxu0 %v7553_v32  ;;  %v7580_v32 = vld [vmem:[#allocation2 + $0x308] sm:$0xff] }
  0x53   :  { %4672 = vmatpush.bf16.msra.mxu1 %v7561_v33  ;;  %v7588_v33 = vld [vmem:[#allocation2 + $0x348] sm:$0xff] }
  0x54   :  { %4685 = vmatpush.bf16.msra.mxu2 %v7569_v34  ;;  %v67_v34 = vld [vmem:[%s8395_s0 + $0x20] sm:$0xff] }
  0x55   :  { %4698 = vmatpush.bf16.msra.mxu3 %v7577_v35  ;;  %v83_v35 = vld [vmem:[%s8395_s0 + $0xa0] sm:$0xff]  ;;  %230 = vst [vmem:[#allocation1] ss:$4 sm:$0xff] %v67_v34 }
  0x56   :  { %4660 = vmatpush.bf16.msra.mxu0 %v7552_v36  ;;  %v99_v36 = vld [vmem:[%s8395_s0 + $0x120] sm:$0xff]  ;;  %231 = vst [vmem:[#allocation1 + $0x1] ss:$4 sm:$0xff] %v83_v35 }
  0x57   :  { %4673 = vmatpush.bf16.msra.mxu1 %v7560_v37  ;;  %v7596_v37 = vld [vmem:[#allocation2 + $0x388] sm:$0xff]  ;;  %232 = vst [vmem:[#allocation1 + $0x2] ss:$4 sm:$0xff] %v99_v36  ;;  %v7649_v36 = vld [vmem:[#allocation2 + $0x530] sm:$0xff] }
  0x58   :  { %4686 = vmatpush.bf16.msra.mxu2 %v7568_v38  ;;  %v7604_v38 = vld [vmem:[#allocation2 + $0x3c8] sm:$0xff] }
  0x59   :  { %4699 = vmatpush.bf16.msra.mxu3 %v7576_v39  ;;  %v115_v39 = vld [vmem:[%s8395_s0 + $0x1a0] sm:$0xff] }
  0x5a   :  { %4661 = vmatpush.bf16.msra.mxu0 %v7551_v40  ;;  %v7579_v40 = vld [vmem:[#allocation2 + $0x300] sm:$0xff]  ;;  %233 = vst [vmem:[#allocation1 + $0x3] ss:$4 sm:$0xff] %v115_v39  ;;  %v7673_v39 = vld [vmem:[#allocation2 + $0x5f0] sm:$0xff] }
  0x5b   :  { %4674 = vmatpush.bf16.msra.mxu1 %v7559_v41  ;;  %v7587_v41 = vld [vmem:[#allocation2 + $0x340] sm:$0xff] }
  0x5c   :  { %4687 = vmatpush.bf16.msra.mxu2 %v7567_v42  ;;  %v7595_v42 = vld [vmem:[#allocation2 + $0x380] sm:$0xff] }
  0x5d   :  { %4700 = vmatpush.bf16.msra.mxu3 %v7575_v43  ;;  %v7603_v43 = vld [vmem:[#allocation2 + $0x3c0] sm:$0xff] }
  0x5e   :  { %4662 = vmatpush.bf16.msra.mxu0 %v7550_v44  ;;  %v7618_v44 = vld [vmem:[#allocation2 + $0x438] sm:$0xff] }
  0x5f   :  { %4675 = vmatpush.bf16.msra.mxu1 %v7558_v45  ;;  %v7626_v45 = vld [vmem:[#allocation2 + $0x478] sm:$0xff] }
  0x60   :  { %4688 = vmatpush.bf16.msra.mxu2 %v7566_v46  ;;  %v226_v46 = vld.sshfl [vmem:[#allocation1 + $0x20] sm:$0xff pattern:$0x73625140] }
  0x61   :  { %4701 = vmatpush.bf16.msra.mxu3 %v7574_v47  ;;  %v228_v47 = vld.sshfl [vmem:[#allocation1 + $0x30] sm:$0xff pattern:$0x73625140] }
  0x62   :  { %4663 = vmatpush.bf16.msra.mxu0 %v7549_v48  ;;  %v227_v48 = vld.sshfl [vmem:[#allocation1 + $0x28] sm:$0xff pattern:$0x73625140] }
  0x63   :  { %4676 = vmatpush.bf16.msra.mxu1 %v7557_v49  ;;  %v229_v49 = vld.sshfl [vmem:[#allocation1 + $0x38] sm:$0xff pattern:$0x73625140]  ;;  %v403_v54 = vpack.c.bf16 %v227_v48, %v227_v48 }
  0x64   :  { %4689 = vmatpush.bf16.msra.mxu2 %v7565_v50  ;;  %v7634_v50 = vld [vmem:[#allocation2 + $0x4b8] sm:$0xff]  ;;  %v405_v55 = vpack.c.bf16 %v229_v49, %v229_v49 }
  0x65   :  { %4702 = vmatpush.bf16.msra.mxu3 %v7573_v51  ;;  %v7642_v51 = vld [vmem:[#allocation2 + $0x4f8] sm:$0xff] }
  0x66   :  { %4664 = vmatpush.bf16.msra.mxu0 %v7548_v52  ;;  %v402_v52 = vpack.c.bf16 %v226_v46, %v226_v46  ;;  %v7647_v46 = vld [vmem:[#allocation2 + $0x520] sm:$0xff] }
  0x67   :  { %4677 = vmatpush.bf16.msra.mxu1 %v7556_v53  ;;  %v404_v53 = vpack.c.bf16 %v228_v47, %v228_v47  ;;  %v7655_v47 = vld [vmem:[#allocation2 + $0x560] sm:$0xff] }
  0x68   :  { %4690 = vmatpush.bf16.msra.mxu2 %v7564_v57  ;;  %v7625_v57 = vld [vmem:[#allocation2 + $0x470] sm:$0xff] }
  0x69   :  { %4703 = vmatpush.bf16.msra.mxu3 %v7572_v58  ;;  %v7633_v58 = vld [vmem:[#allocation2 + $0x4b0] sm:$0xff] }
  0x6a   :  { %4665 = vmatpush.bf16.msra.mxu0 %v7547_v60  ;;  %v7616_v60 = vld [vmem:[#allocation2 + $0x428] sm:$0xff] }
  0x6b   :  { %4678 = vmatpush.bf16.msra.mxu1 %v7555_v61  ;;  %v7624_v61 = vld [vmem:[#allocation2 + $0x468] sm:$0xff] }
  0x6c   :  { %4691 = vmatpush.bf16.msra.mxu2 %v7563_v62  ;;  %v7632_v62 = vld [vmem:[#allocation2 + $0x4a8] sm:$0xff] }
  0x6d   :  { %4704 = vmatpush.bf16.msra.mxu3 %v7571_v63  ;;  %4666 = vmatmul.bf16.vlgmr.msra.gmra.mxu0 %v398_v8  ;;  %v7640_v63 = vld [vmem:[#allocation2 + $0x4e8] sm:$0xff]  ;;  %v7613_v8 = vld [vmem:[#allocation2 + $0x410] sm:$0xff] }
  0x6e   :  { %4710 = vmatpush.bf16.msrb.mxu0 %v7586_v0  ;;  %4679 = vmatmul.bf16.vlgmr.msra.gmra.mxu1 %v399_v10  ;;  %v7615_v0 = vld [vmem:[#allocation2 + $0x420] sm:$0xff]  ;;  %v7629_v10 = vld [vmem:[#allocation2 + $0x490] sm:$0xff] }
  0x6f   :  { %4723 = vmatpush.bf16.msrb.mxu1 %v7594_v1  ;;  %4692 = vmatmul.bf16.vlgmr.msra.gmra.mxu2 %v400_v9  ;;  %v7623_v1 = vld [vmem:[#allocation2 + $0x460] sm:$0xff]  ;;  %v7621_v9 = vld [vmem:[#allocation2 + $0x450] sm:$0xff] }
  0x70   :  { %4736 = vmatpush.bf16.msrb.mxu2 %v7602_v6  ;;  %4705 = vmatmul.bf16.vlgmr.msra.gmra.mxu3 %v401_v11  ;;  %v7630_v6 = vld [vmem:[#allocation2 + $0x498] sm:$0xff]  ;;  %v7637_v11 = vld [vmem:[#allocation2 + $0x4d0] sm:$0xff] }
  0x71   :  { %4749 = vmatpush.bf16.msrb.mxu3 %v7610_v7  ;;  %v7638_v7 = vld [vmem:[#allocation2 + $0x4d8] sm:$0xff] }
  0x72   :  { %4711 = vmatpush.bf16.msrb.mxu0 %v7585_v12  ;;  %v7612_v12 = vld [vmem:[#allocation2 + $0x408] sm:$0xff] }
  0x73   :  { %4724 = vmatpush.bf16.msrb.mxu1 %v7593_v13  ;;  %v7620_v13 = vld [vmem:[#allocation2 + $0x448] sm:$0xff] }
  0x74   :  { %4737 = vmatpush.bf16.msrb.mxu2 %v7601_v14  ;;  %v68_v14 = vld [vmem:[%s8395_s0 + $0x28] sm:$0xff] }
  0x75   :  { %4750 = vmatpush.bf16.msrb.mxu3 %v7609_v15  ;;  %v84_v15 = vld [vmem:[%s8395_s0 + $0xa8] sm:$0xff]  ;;  %234 = vst [vmem:[#allocation1 + $0x20] ss:$4 sm:$0xff] %v68_v14 }
  0x76   :  { %4712 = vmatpush.bf16.msrb.mxu0 %v7584_v16  ;;  %v100_v16 = vld [vmem:[%s8395_s0 + $0x128] sm:$0xff]  ;;  %235 = vst [vmem:[#allocation1 + $0x21] ss:$4 sm:$0xff] %v84_v15 }
  0x77   :  { %4725 = vmatpush.bf16.msrb.mxu1 %v7592_v17  ;;  %v7628_v17 = vld [vmem:[#allocation2 + $0x488] sm:$0xff]  ;;  %236 = vst [vmem:[#allocation1 + $0x22] ss:$4 sm:$0xff] %v100_v16  ;;  %v7651_v14 = vld [vmem:[#allocation2 + $0x540] sm:$0xff] }
  0x78   :  { %4738 = vmatpush.bf16.msrb.mxu2 %v7600_v18  ;;  %v7636_v18 = vld [vmem:[#allocation2 + $0x4c8] sm:$0xff]  ;;  %v7659_v15 = vld [vmem:[#allocation2 + $0x580] sm:$0xff] }
  0x79   :  { %4751 = vmatpush.bf16.msrb.mxu3 %v7608_v19  ;;  %v116_v19 = vld [vmem:[%s8395_s0 + $0x1a8] sm:$0xff] }
  0x7a   :  { %4713 = vmatpush.bf16.msrb.mxu0 %v7583_v20  ;;  %v7611_v20 = vld [vmem:[#allocation2 + $0x400] sm:$0xff]  ;;  %237 = vst [vmem:[#allocation1 + $0x23] ss:$4 sm:$0xff] %v116_v19 }
  0x7b   :  { %4726 = vmatpush.bf16.msrb.mxu1 %v7591_v21  ;;  %v7619_v21 = vld [vmem:[#allocation2 + $0x440] sm:$0xff] }
  0x7c   :  { %4739 = vmatpush.bf16.msrb.mxu2 %v7599_v22  ;;  %v7627_v22 = vld [vmem:[#allocation2 + $0x480] sm:$0xff] }
  0x7d   :  { %4752 = vmatpush.bf16.msrb.mxu3 %v7607_v23  ;;  %v7635_v23 = vld [vmem:[#allocation2 + $0x4c0] sm:$0xff] }
  0x7e   :  { %4714 = vmatpush.bf16.msrb.mxu0 %v7582_v24  ;;  %v7650_v24 = vld [vmem:[#allocation2 + $0x538] sm:$0xff]  ;;  %v7667_v16 = vld [vmem:[#allocation2 + $0x5c0] sm:$0xff] }
  0x7f   :  { %4727 = vmatpush.bf16.msrb.mxu1 %v7590_v25  ;;  %v7658_v25 = vld [vmem:[#allocation2 + $0x578] sm:$0xff] }
  0x80   :  { %4740 = vmatpush.bf16.msrb.mxu2 %v7598_v26  ;;  %v238_v26 = vld.sshfl [vmem:[#allocation1] sm:$0xff pattern:$0x73625140] }
  0x81   :  { %4753 = vmatpush.bf16.msrb.mxu3 %v7606_v27  ;;  %v240_v27 = vld.sshfl [vmem:[#allocation1 + $0x10] sm:$0xff pattern:$0x73625140]  ;;  %v242_v19 = vld.sshfl [vmem:[#allocation1 + $0x20] sm:$0xff pattern:$0x73625140] }
  0x82   :  { %4715 = vmatpush.bf16.msrb.mxu0 %v7581_v28  ;;  %v239_v28 = vld.sshfl [vmem:[#allocation1 + $0x8] sm:$0xff pattern:$0x73625140] }
  0x83   :  { %4728 = vmatpush.bf16.msrb.mxu1 %v7589_v29  ;;  %v241_v29 = vld.sshfl [vmem:[#allocation1 + $0x18] sm:$0xff pattern:$0x73625140]  ;;  %v407_v34 = vpack.c.bf16 %v239_v28, %v239_v28 }
  0x84   :  { %4741 = vmatpush.bf16.msrb.mxu2 %v7597_v30  ;;  %v7666_v30 = vld [vmem:[#allocation2 + $0x5b8] sm:$0xff]  ;;  %v409_v35 = vpack.c.bf16 %v241_v29, %v241_v29  ;;  %v7681_v29 = vld [vmem:[#allocation2 + $0x630] sm:$0xff] }
  0x85   :  { %4754 = vmatpush.bf16.msrb.mxu3 %v7605_v31  ;;  %v7674_v31 = vld [vmem:[#allocation2 + $0x5f8] sm:$0xff] }
  0x86   :  { %4716 = vmatpush.bf16.msrb.mxu0 %v7580_v32  ;;  %v406_v32 = vpack.c.bf16 %v238_v26, %v238_v26 }
  0x87   :  { %4729 = vmatpush.bf16.msrb.mxu1 %v7588_v33  ;;  %v408_v33 = vpack.c.bf16 %v240_v27, %v240_v27 }
  0x88   :  { %4742 = vmatpush.bf16.msrb.mxu2 %v7596_v37  ;;  %v7657_v37 = vld [vmem:[#allocation2 + $0x570] sm:$0xff] }
  0x89   :  { %4755 = vmatpush.bf16.msrb.mxu3 %v7604_v38  ;;  %v7665_v38 = vld [vmem:[#allocation2 + $0x5b0] sm:$0xff] }
  0x8a   :  { %4717 = vmatpush.bf16.msrb.mxu0 %v7579_v40  ;;  %v7648_v40 = vld [vmem:[#allocation2 + $0x528] sm:$0xff] }
  0x8b   :  { %4730 = vmatpush.bf16.msrb.mxu1 %v7587_v41  ;;  %v7656_v41 = vld [vmem:[#allocation2 + $0x568] sm:$0xff] }
  0x8c   :  { %4743 = vmatpush.bf16.msrb.mxu2 %v7595_v42  ;;  %v8000_v42 = vld [vmem:[#allocation4] ss:$0 sm:$0xff] }
  0x8d   :  { %4756 = vmatpush.bf16.msrb.mxu3 %v7603_v43  ;;  %4718 = vmatmul.bf16.vlgmr.msrb.gmra.mxu0 %v402_v52  ;;  %v7664_v43 = vld [vmem:[#allocation2 + $0x5a8] sm:$0xff] }
  0x8e   :  { %4762 = vmatpush.bf16.msra.mxu0 %v7618_v44  ;;  %4731 = vmatmul.bf16.vlgmr.msrb.gmra.mxu1 %v403_v54  ;;  %v7672_v44 = vld [vmem:[#allocation2 + $0x5e8] sm:$0xff]  ;;  %v7654_v54 = vld [vmem:[#allocation2 + $0x558] sm:$0xff] }
  0x8f   :  { %4775 = vmatpush.bf16.msra.mxu1 %v7626_v45  ;;  %4744 = vmatmul.bf16.vlgmr.msrb.gmra.mxu2 %v404_v53  ;;  %v7646_v53 = vld [vmem:[#allocation2 + $0x518] sm:$0xff] }
  0x90   :  { %4788 = vmatpush.bf16.msra.mxu2 %v7634_v50  ;;  %4757 = vmatmul.bf16.vlgmr.msrb.gmra.mxu3 %v405_v55  ;;  %v7663_v50 = vld [vmem:[#allocation2 + $0x5a0] sm:$0xff]  ;;  %v7662_v55 = vld [vmem:[#allocation2 + $0x598] sm:$0xff] }
  0x91   :  { %4801 = vmatpush.bf16.msra.mxu3 %v7642_v51  ;;  %v7671_v51 = vld [vmem:[#allocation2 + $0x5e0] sm:$0xff] }
  0x92   :  { %4763 = vmatpush.bf16.msra.mxu0 %v7617_v56  ;;  %v7670_v56 = vld [vmem:[#allocation2 + $0x5d8] sm:$0xff] }
  0x93   :  { %4776 = vmatpush.bf16.msra.mxu1 %v7625_v57 }
  0x94   :  { %4789 = vmatpush.bf16.msra.mxu2 %v7633_v58 }
  0x95   :  { %4802 = vmatpush.bf16.msra.mxu3 %v7641_v59 }
  0x96   :  { %4764 = vmatpush.bf16.msra.mxu0 %v7616_v60 }
  0x97   :  { %4777 = vmatpush.bf16.msra.mxu1 %v7624_v61  ;;  %v7645_v61 = vld [vmem:[#allocation2 + $0x510] sm:$0xff] }
  0x98   :  { %4790 = vmatpush.bf16.msra.mxu2 %v7632_v62  ;;  %v7653_v62 = vld [vmem:[#allocation2 + $0x550] sm:$0xff] }
  0x99   :  { %4803 = vmatpush.bf16.msra.mxu3 %v7640_v63 }
  0x9a   :  { %4765 = vmatpush.bf16.msra.mxu0 %v7615_v0 }
  0x9b   :  { %4778 = vmatpush.bf16.msra.mxu1 %v7623_v1  ;;  %v7661_v1 = vld [vmem:[#allocation2 + $0x590] sm:$0xff] }
  0x9c   :  { %4791 = vmatpush.bf16.msra.mxu2 %v7631_v2  ;;  %v7669_v2 = vld [vmem:[#allocation2 + $0x5d0] sm:$0xff] }
  0x9d   :  { %4804 = vmatpush.bf16.msra.mxu3 %v7639_v3  ;;  %v7644_v3 = vld [vmem:[#allocation2 + $0x508] sm:$0xff] }
  0x9e   :  { %4766 = vmatpush.bf16.msra.mxu0 %v7614_v4  ;;  %v7652_v4 = vld [vmem:[#allocation2 + $0x548] sm:$0xff] }
  0x9f   :  { %4779 = vmatpush.bf16.msra.mxu1 %v7622_v5  ;;  %v69_v5 = vld [vmem:[%s8395_s0 + $0x30] sm:$0xff] }
  0xa0   :  { %4792 = vmatpush.bf16.msra.mxu2 %v7630_v6  ;;  %v85_v6 = vld [vmem:[%s8395_s0 + $0xb0] sm:$0xff]  ;;  %246 = vst [vmem:[#allocation1] ss:$4 sm:$0xff] %v69_v5  ;;  %v7675_v5 = vld [vmem:[#allocation2 + $0x600] sm:$0xff] }
  0xa1   :  { %4805 = vmatpush.bf16.msra.mxu3 %v7638_v7  ;;  %v101_v7 = vld [vmem:[%s8395_s0 + $0x130] sm:$0xff]  ;;  %247 = vst [vmem:[#allocation1 + $0x1] ss:$4 sm:$0xff] %v85_v6  ;;  %v7683_v6 = vld [vmem:[#allocation2 + $0x640] sm:$0xff] }
  0xa2   :  { %4767 = vmatpush.bf16.msra.mxu0 %v7613_v8  ;;  %v7660_v8 = vld [vmem:[#allocation2 + $0x588] sm:$0xff]  ;;  %248 = vst [vmem:[#allocation1 + $0x2] ss:$4 sm:$0xff] %v101_v7  ;;  %v7691_v7 = vld [vmem:[#allocation2 + $0x680] sm:$0xff] }
  0xa3   :  { %4780 = vmatpush.bf16.msra.mxu1 %v7621_v9  ;;  %v7668_v9 = vld [vmem:[#allocation2 + $0x5c8] sm:$0xff] }
  0xa4   :  { %4793 = vmatpush.bf16.msra.mxu2 %v7629_v10 }
  0xa5   :  { %4806 = vmatpush.bf16.msra.mxu3 %v7637_v11 }
  0xa6   :  { %4768 = vmatpush.bf16.msra.mxu0 %v7612_v12  ;;  %v117_v12 = vld [vmem:[%s8395_s0 + $0x1b0] sm:$0xff] }
  0xa7   :  { %4781 = vmatpush.bf16.msra.mxu1 %v7620_v13  ;;  %v7643_v13 = vld [vmem:[#allocation2 + $0x500] sm:$0xff]  ;;  %249 = vst [vmem:[#allocation1 + $0x3] ss:$4 sm:$0xff] %v117_v12 }
  0xa8   :  { %4794 = vmatpush.bf16.msra.mxu2 %v7628_v17  ;;  %v7682_v17 = vld [vmem:[#allocation2 + $0x638] sm:$0xff] }
  0xa9   :  { %4807 = vmatpush.bf16.msra.mxu3 %v7636_v18  ;;  %v7690_v18 = vld [vmem:[#allocation2 + $0x678] sm:$0xff] }
  0xaa   :  { %4769 = vmatpush.bf16.msra.mxu0 %v7611_v20  ;;  %v4563_v45 = vpop.f32.mrf.mxu0  ;;  %v244_v20 = vld.sshfl [vmem:[#allocation1 + $0x30] sm:$0xff pattern:$0x73625140] }
  0xab   :  { %4782 = vmatpush.bf16.msra.mxu1 %v7619_v21  ;;  %v4564_v48 = vadd.f32 %v8000_v42, %v4563_v45  ;;  %v4576_v49 = vpop.f32.mrf.mxu1  ;;  %v243_v21 = vld.sshfl [vmem:[#allocation1 + $0x28] sm:$0xff pattern:$0x73625140]  ;;  %v412_v26 = vpack.c.bf16 %v244_v20, %v244_v20  ;;  %v7678_v45 = vld [vmem:[#allocation2 + $0x618] sm:$0xff] }
  0xac   :  { %4795 = vmatpush.bf16.msra.mxu2 %v7627_v22  ;;  %v245_v22 = vld.sshfl [vmem:[#allocation1 + $0x38] sm:$0xff pattern:$0x73625140]  ;;  %v411_v27 = vpack.c.bf16 %v243_v21, %v243_v21  ;;  %v7695_v42 = vld [vmem:[#allocation2 + $0x6a0] sm:$0xff] }
  0xad   :  { %4808 = vmatpush.bf16.msra.mxu3 %v7635_v23  ;;  %4770 = vmatmul.bf16.vlgmr.msra.gmra.mxu0 %v406_v32  ;;  %v4577_v52 = vadd.f32 %v4576_v49, %v4564_v48  ;;  %v7698_v23 = vld [vmem:[#allocation2 + $0x6b8] sm:$0xff]  ;;  %v413_v28 = vpack.c.bf16 %v245_v22, %v245_v22  ;;  %v7705_v32 = vld [vmem:[#allocation2 + $0x6f0] sm:$0xff] }
  0xae   :  { %4814 = vmatpush.bf16.msrb.mxu0 %v7650_v24  ;;  %4783 = vmatmul.bf16.vlgmr.msra.gmra.mxu1 %v407_v34  ;;  %v7706_v24 = vld [vmem:[#allocation2 + $0x6f8] sm:$0xff]  ;;  %v7688_v34 = vld [vmem:[#allocation2 + $0x668] sm:$0xff]  ;;  %v7713_v21 = vld [vmem:[#allocation2 + $0x730] sm:$0xff] }
  0xaf   :  { %4827 = vmatpush.bf16.msrb.mxu1 %v7658_v25  ;;  %4796 = vmatmul.bf16.vlgmr.msra.gmra.mxu2 %v408_v33  ;;  %v410_v25 = vpack.c.bf16 %v242_v19, %v242_v19  ;;  %v7680_v33 = vld [vmem:[#allocation2 + $0x628] sm:$0xff]  ;;  %v7702_v48 = vld [vmem:[#allocation2 + $0x6d8] sm:$0xff]  ;;  %v7721_v22 = vld [vmem:[#allocation2 + $0x770] sm:$0xff] }
  0xb0   :  { %4840 = vmatpush.bf16.msrb.mxu2 %v7666_v30  ;;  %4809 = vmatmul.bf16.vlgmr.msra.gmra.mxu3 %v409_v35  ;;  %v7689_v30 = vld [vmem:[#allocation2 + $0x670] sm:$0xff]  ;;  %v7696_v35 = vld [vmem:[#allocation2 + $0x6a8] sm:$0xff] }
  0xb1   :  { %4853 = vmatpush.bf16.msrb.mxu3 %v7674_v31  ;;  %v7697_v31 = vld [vmem:[#allocation2 + $0x6b0] sm:$0xff]  ;;  %v256_v12 = vld.sshfl [vmem:[#allocation1 + $0x10] sm:$0xff pattern:$0x73625140] }
  0xb2   :  { %4815 = vmatpush.bf16.msrb.mxu0 %v7649_v36  ;;  %v4589_v57 = vpop.f32.mrf.mxu2  ;;  %v4565_v60 = vpop.f32.mrf.mxu0  ;;  %v7704_v36 = vld [vmem:[#allocation2 + $0x6e8] sm:$0xff] }
  0xb3   :  { %4828 = vmatpush.bf16.msrb.mxu1 %v7657_v37  ;;  %v4590_v58 = vadd.f32 %v4589_v57, %v4577_v52  ;;  %v4602_v59 = vpop.f32.mrf.mxu3  ;;  %v4578_v0 = vpop.f32.mrf.mxu1  ;;  %v7693_v57 = vld [vmem:[#allocation2 + $0x690] sm:$0xff]  ;;  %v7684_v60 = vld [vmem:[#allocation2 + $0x648] sm:$0xff] }
  0xb4   :  { %4841 = vmatpush.bf16.msrb.mxu2 %v7665_v38  ;;  %v7679_v38 = vld [vmem:[#allocation2 + $0x620] sm:$0xff]  ;;  %v7692_v0 = vld [vmem:[#allocation2 + $0x688] sm:$0xff] }
  0xb5   :  { %4854 = vmatpush.bf16.msrb.mxu3 %v7673_v39  ;;  %v8194_v63 = vadd.f32 %v4602_v59, %v4590_v58  ;;  %v7687_v39 = vld [vmem:[#allocation2 + $0x660] sm:$0xff]  ;;  %v7701_v58 = vld [vmem:[#allocation2 + $0x6d0] sm:$0xff]  ;;  %v7676_v59 = vld [vmem:[#allocation2 + $0x608] sm:$0xff] }
  0xb6   :  { %4816 = vmatpush.bf16.msrb.mxu0 %v7648_v40 }
  0xb7   :  { %4829 = vmatpush.bf16.msrb.mxu1 %v7656_v41 }
  0xb8   :  { %4842 = vmatpush.bf16.msrb.mxu2 %v7664_v43  ;;  %v7703_v43 = vld [vmem:[#allocation2 + $0x6e0] sm:$0xff] }
  0xb9   :  { %4855 = vmatpush.bf16.msrb.mxu3 %v7672_v44 }
  0xba   :  { %4817 = vmatpush.bf16.msrb.mxu0 %v7647_v46  ;;  %v4591_v10 = vpop.f32.mrf.mxu2  ;;  %v7686_v46 = vld [vmem:[#allocation2 + $0x658] sm:$0xff] }
  0xbb   :  { %4830 = vmatpush.bf16.msrb.mxu1 %v7655_v47  ;;  %v4604_v11 = vpop.f32.mrf.mxu3  ;;  %v7694_v47 = vld [vmem:[#allocation2 + $0x698] sm:$0xff] }
  0xbc   :  { %4843 = vmatpush.bf16.msrb.mxu2 %v7663_v50  ;;  %v7722_v10 = vld [vmem:[#allocation2 + $0x778] sm:$0xff] }
  0xbd   :  { %4856 = vmatpush.bf16.msrb.mxu3 %v7671_v51  ;;  %v254_v11 = vld.sshfl [vmem:[#allocation1] sm:$0xff pattern:$0x73625140] }
  0xbe   :  { %4818 = vmatpush.bf16.msrb.mxu0 %v7646_v53  ;;  %v7677_v53 = vld [vmem:[#allocation2 + $0x610] sm:$0xff] }
  0xbf   :  { %4831 = vmatpush.bf16.msrb.mxu1 %v7654_v54  ;;  %v7685_v54 = vld [vmem:[#allocation2 + $0x650] sm:$0xff] }
  0xc0   :  { %4844 = vmatpush.bf16.msrb.mxu2 %v7662_v55 }
  0xc1   :  { %4857 = vmatpush.bf16.msrb.mxu3 %v7670_v56 }
  0xc2   :  { %4819 = vmatpush.bf16.msrb.mxu0 %v7645_v61  ;;  %v70_v61 = vld [vmem:[%s8395_s0 + $0x38] sm:$0xff] }
  0xc3   :  { %4832 = vmatpush.bf16.msrb.mxu1 %v7653_v62  ;;  %v86_v62 = vld [vmem:[%s8395_s0 + $0xb8] sm:$0xff]  ;;  %250 = vst [vmem:[#allocation1 + $0x20] ss:$4 sm:$0xff] %v70_v61  ;;  %v7707_v61 = vld [vmem:[#allocation2 + $0x700] sm:$0xff] }
  0xc4   :  { %4845 = vmatpush.bf16.msrb.mxu2 %v7661_v1  ;;  %v7700_v1 = vld [vmem:[#allocation2 + $0x6c8] sm:$0xff]  ;;  %251 = vst [vmem:[#allocation1 + $0x21] ss:$4 sm:$0xff] %v86_v62  ;;  %v7715_v62 = vld [vmem:[#allocation2 + $0x740] sm:$0xff] }
  0xc5   :  { %4858 = vmatpush.bf16.msrb.mxu3 %v7669_v2 }
  0xc6   :  { %4820 = vmatpush.bf16.msrb.mxu0 %v7644_v3 }
  0xc7   :  { %4833 = vmatpush.bf16.msrb.mxu1 %v7652_v4  ;;  %v118_v4 = vld [vmem:[%s8395_s0 + $0x1b8] sm:$0xff] }
  0xc8   :  { %4846 = vmatpush.bf16.msrb.mxu2 %v7660_v8  ;;  %v7699_v8 = vld [vmem:[#allocation2 + $0x6c0] sm:$0xff]  ;;  %253 = vst [vmem:[#allocation1 + $0x23] ss:$4 sm:$0xff] %v118_v4 }
  0xc9   :  { %4859 = vmatpush.bf16.msrb.mxu3 %v7668_v9  ;;  %v7714_v9 = vld [vmem:[#allocation2 + $0x738] sm:$0xff] }
  0xca   :  { %4821 = vmatpush.bf16.msrb.mxu0 %v7643_v13  ;;  %v4615_v37 = vpop.f32.mrf.mxu0  ;;  %v255_v13 = vld.sshfl [vmem:[#allocation1 + $0x8] sm:$0xff pattern:$0x73625140] }
  0xcb   :  { %4834 = vmatpush.bf16.msrb.mxu1 %v7651_v14  ;;  %v4616_v40 = vadd.f32 %v4615_v37, %v8194_v63  ;;  %v4628_v41 = vpop.f32.mrf.mxu1  ;;  %v102_v63 = vld [vmem:[%s8395_s0 + $0x138] sm:$0xff]  ;;  %v415_v19 = vpack.c.bf16 %v255_v13, %v255_v13  ;;  %v7710_v37 = vld [vmem:[#allocation2 + $0x718] sm:$0xff] }
  0xcc   :  { %4847 = vmatpush.bf16.msrb.mxu2 %v7659_v15  ;;  %252 = vst [vmem:[#allocation1 + $0x22] ss:$4 sm:$0xff] %v102_v63  ;;  %v257_v14 = vld.sshfl [vmem:[#allocation1 + $0x18] sm:$0xff pattern:$0x73625140]  ;;  %v7730_v15 = vld [vmem:[#allocation2 + $0x7b8] sm:$0xff] }
  0xcd   :  { %4860 = vmatpush.bf16.msrb.mxu3 %v7667_v16  ;;  %4822 = vmatmul.bf16.vlgmr.msrb.gmra.mxu0 %v410_v25  ;;  %v4629_v44 = vadd.f32 %v4628_v41, %v4616_v40  ;;  %v7738_v16 = vld [vmem:[#allocation2 + $0x7f8] sm:$0xff]  ;;  %v417_v20 = vpack.c.bf16 %v257_v14, %v257_v14  ;;  %v7712_v25 = vld [vmem:[#allocation2 + $0x728] sm:$0xff]  ;;  %v7723_v63 = vld [vmem:[#allocation2 + $0x780] sm:$0xff] }
  0xce   :  { %4866 = vmatpush.bf16.msra.mxu0 %v7682_v17  ;;  %4835 = vmatmul.bf16.vlgmr.msrb.gmra.mxu1 %v411_v27  ;;  %v414_v17 = vpack.c.bf16 %v254_v11, %v254_v11  ;;  %v7728_v27 = vld [vmem:[#allocation2 + $0x7a8] sm:$0xff]  ;;  %v7734_v40 = vld [vmem:[#allocation2 + $0x7d8] sm:$0xff]  ;;  %v7745_v13 = vld [vmem:[#allocation2 + $0x830] sm:$0xff] }
  0xcf   :  { %4879 = vmatpush.bf16.msra.mxu1 %v7690_v18  ;;  %4848 = vmatmul.bf16.vlgmr.msrb.gmra.mxu2 %v412_v26  ;;  %v416_v18 = vpack.c.bf16 %v256_v12, %v256_v12  ;;  %v7720_v26 = vld [vmem:[#allocation2 + $0x768] sm:$0xff]  ;;  %v7753_v14 = vld [vmem:[#allocation2 + $0x870] sm:$0xff] }
  0xd0   :  { %4892 = vmatpush.bf16.msra.mxu2 %v7698_v23  ;;  %4861 = vmatmul.bf16.vlgmr.msrb.gmra.mxu3 %v413_v28  ;;  %v7729_v23 = vld [vmem:[#allocation2 + $0x7b0] sm:$0xff]  ;;  %v7736_v28 = vld [vmem:[#allocation2 + $0x7e8] sm:$0xff] }
  0xd1   :  { %4905 = vmatpush.bf16.msra.mxu3 %v7706_v24  ;;  %v7737_v24 = vld [vmem:[#allocation2 + $0x7f0] sm:$0xff] }
  0xd2   :  { %4867 = vmatpush.bf16.msra.mxu0 %v7681_v29  ;;  %v4641_v49 = vpop.f32.mrf.mxu2  ;;  %v4617_v52 = vpop.f32.mrf.mxu0 }
  0xd3   :  { %4880 = vmatpush.bf16.msra.mxu1 %v7689_v30  ;;  %v4642_v50 = vadd.f32 %v4641_v49, %v4629_v44  ;;  %v4654_v51 = vpop.f32.mrf.mxu3  ;;  %v4630_v56 = vpop.f32.mrf.mxu1  ;;  %v7725_v49 = vld [vmem:[#allocation2 + $0x790] sm:$0xff]  ;;  %v7716_v52 = vld [vmem:[#allocation2 + $0x748] sm:$0xff] }
  0xd4   :  { %4893 = vmatpush.bf16.msra.mxu2 %v7697_v31  ;;  %v7711_v31 = vld [vmem:[#allocation2 + $0x720] sm:$0xff]  ;;  %v7724_v56 = vld [vmem:[#allocation2 + $0x788] sm:$0xff] }
  0xd5   :  { %4906 = vmatpush.bf16.msra.mxu3 %v7705_v32  ;;  %v8209_v55 = vadd.f32 %v4654_v51, %v4642_v50  ;;  %v7719_v32 = vld [vmem:[#allocation2 + $0x760] sm:$0xff]  ;;  %v7733_v50 = vld [vmem:[#allocation2 + $0x7d0] sm:$0xff]  ;;  %v7708_v51 = vld [vmem:[#allocation2 + $0x708] sm:$0xff] }
  0xd6   :  { %4868 = vmatpush.bf16.msra.mxu0 %v7680_v33  ;;  %v260_v4 = vld.sshfl [vmem:[#allocation1 + $0x30] sm:$0xff pattern:$0x73625140] }
  0xd7   :  { %4881 = vmatpush.bf16.msra.mxu1 %v7688_v34  ;;  %v7727_v34 = vld [vmem:[#allocation2 + $0x7a0] sm:$0xff] }
  0xd8   :  { %4894 = vmatpush.bf16.msra.mxu2 %v7696_v35  ;;  %v7735_v35 = vld [vmem:[#allocation2 + $0x7e0] sm:$0xff] }
  0xd9   :  { %4907 = vmatpush.bf16.msra.mxu3 %v7704_v36 }
  0xda   :  { %4869 = vmatpush.bf16.msra.mxu0 %v7679_v38  ;;  %v4643_v2 = vpop.f32.mrf.mxu2  ;;  %v7718_v38 = vld [vmem:[#allocation2 + $0x758] sm:$0xff] }
  0xdb   :  { %4882 = vmatpush.bf16.msra.mxu1 %v7687_v39  ;;  %v4656_v3 = vpop.f32.mrf.mxu3  ;;  %v7726_v39 = vld [vmem:[#allocation2 + $0x798] sm:$0xff] }
  0xdc   :  { %4895 = vmatpush.bf16.msra.mxu2 %v7695_v42  ;;  %v7754_v2 = vld [vmem:[#allocation2 + $0x878] sm:$0xff] }
  0xdd   :  { %4908 = vmatpush.bf16.msra.mxu3 %v7703_v43  ;;  %v258_v3 = vld.sshfl [vmem:[#allocation1 + $0x20] sm:$0xff pattern:$0x73625140] }
  0xde   :  { %4870 = vmatpush.bf16.msra.mxu0 %v7678_v45 }
  0xdf   :  { %4883 = vmatpush.bf16.msra.mxu1 %v7686_v46  ;;  %v7709_v46 = vld [vmem:[#allocation2 + $0x710] sm:$0xff] }
  0xe0   :  { %4896 = vmatpush.bf16.msra.mxu2 %v7694_v47  ;;  %v7717_v47 = vld [vmem:[#allocation2 + $0x750] sm:$0xff] }
  0xe1   :  { %4909 = vmatpush.bf16.msra.mxu3 %v7702_v48 }
  0xe2   :  { %4871 = vmatpush.bf16.msra.mxu0 %v7677_v53  ;;  %v71_v53 = vld [vmem:[%s8395_s0 + $0x40] sm:$0xff] }
  0xe3   :  { %4884 = vmatpush.bf16.msra.mxu1 %v7685_v54  ;;  %v87_v54 = vld [vmem:[%s8395_s0 + $0xc0] sm:$0xff]  ;;  %262 = vst [vmem:[#allocation1] ss:$4 sm:$0xff] %v71_v53  ;;  %v7739_v53 = vld [vmem:[#allocation2 + $0x800] sm:$0xff] }
  0xe4   :  { %4897 = vmatpush.bf16.msra.mxu2 %v7693_v57  ;;  %v7732_v57 = vld [vmem:[#allocation2 + $0x7c8] sm:$0xff]  ;;  %263 = vst [vmem:[#allocation1 + $0x1] ss:$4 sm:$0xff] %v87_v54  ;;  %v7747_v54 = vld [vmem:[#allocation2 + $0x840] sm:$0xff] }
  0xe5   :  { %4910 = vmatpush.bf16.msra.mxu3 %v7701_v58 }
  0xe6   :  { %4872 = vmatpush.bf16.msra.mxu0 %v7676_v59 }
  0xe7   :  { %4885 = vmatpush.bf16.msra.mxu1 %v7684_v60  ;;  %v119_v60 = vld [vmem:[%s8395_s0 + $0x1c0] sm:$0xff] }
  0xe8   :  { %4898 = vmatpush.bf16.msra.mxu2 %v7692_v0  ;;  %v7731_v0 = vld [vmem:[#allocation2 + $0x7c0] sm:$0xff]  ;;  %265 = vst [vmem:[#allocation1 + $0x3] ss:$4 sm:$0xff] %v119_v60 }
  0xe9   :  { %4911 = vmatpush.bf16.msra.mxu3 %v7700_v1  ;;  %v7746_v1 = vld [vmem:[#allocation2 + $0x838] sm:$0xff] }
  0xea   :  { %4873 = vmatpush.bf16.msra.mxu0 %v7675_v5  ;;  %v4667_v29 = vpop.f32.mrf.mxu0  ;;  %v259_v5 = vld.sshfl [vmem:[#allocation1 + $0x28] sm:$0xff pattern:$0x73625140] }
  0xeb   :  { %4886 = vmatpush.bf16.msra.mxu1 %v7683_v6  ;;  %v4668_v30 = vadd.f32 %v4667_v29, %v8209_v55  ;;  %v4680_v33 = vpop.f32.mrf.mxu1  ;;  %v103_v55 = vld [vmem:[%s8395_s0 + $0x140] sm:$0xff]  ;;  %v261_v6 = vld.sshfl [vmem:[#allocation1 + $0x38] sm:$0xff pattern:$0x73625140]  ;;  %v419_v11 = vpack.c.bf16 %v259_v5, %v259_v5 }
  0xec   :  { %4899 = vmatpush.bf16.msra.mxu2 %v7691_v7  ;;  %264 = vst [vmem:[#allocation1 + $0x2] ss:$4 sm:$0xff] %v103_v55  ;;  %v7762_v7 = vld [vmem:[#allocation2 + $0x8b8] sm:$0xff]  ;;  %v421_v12 = vpack.c.bf16 %v261_v6, %v261_v6  ;;  %v7755_v55 = vld [vmem:[#allocation2 + $0x880] sm:$0xff]  ;;  %v7777_v5 = vld [vmem:[#allocation2 + $0x930] sm:$0xff] }
  0xed   :  { %4912 = vmatpush.bf16.msra.mxu3 %v7699_v8  ;;  %4874 = vmatmul.bf16.vlgmr.msra.gmra.mxu0 %v414_v17  ;;  %v4681_v36 = vadd.f32 %v4680_v33, %v4668_v30  ;;  %v7770_v8 = vld [vmem:[#allocation2 + $0x8f8] sm:$0xff]  ;;  %v7744_v17 = vld [vmem:[#allocation2 + $0x828] sm:$0xff]  ;;  %v7785_v6 = vld [vmem:[#allocation2 + $0x970] sm:$0xff] }
  0xee   :  { %4918 = vmatpush.bf16.msrb.mxu0 %v7714_v9  ;;  %4887 = vmatmul.bf16.vlgmr.msra.gmra.mxu1 %v415_v19  ;;  %v418_v9 = vpack.c.bf16 %v258_v3, %v258_v3  ;;  %v7760_v19 = vld [vmem:[#allocation2 + $0x8a8] sm:$0xff]  ;;  %v7742_v29 = vld [vmem:[#allocation2 + $0x818] sm:$0xff] }
  0xef   :  { %4931 = vmatpush.bf16.msrb.mxu1 %v7722_v10  ;;  %4900 = vmatmul.bf16.vlgmr.msra.gmra.mxu2 %v416_v18  ;;  %v420_v10 = vpack.c.bf16 %v260_v4, %v260_v4  ;;  %v7752_v18 = vld [vmem:[#allocation2 + $0x868] sm:$0xff]  ;;  %v7750_v30 = vld [vmem:[#allocation2 + $0x858] sm:$0xff] }
  0xf0   :  { %4944 = vmatpush.bf16.msrb.mxu2 %v7730_v15  ;;  %4913 = vmatmul.bf16.vlgmr.msra.gmra.mxu3 %v417_v20  ;;  %v7761_v15 = vld [vmem:[#allocation2 + $0x8b0] sm:$0xff]  ;;  %v7768_v20 = vld [vmem:[#allocation2 + $0x8e8] sm:$0xff] }
  0xf1   :  { %4957 = vmatpush.bf16.msrb.mxu3 %v7738_v16  ;;  %v7769_v16 = vld [vmem:[#allocation2 + $0x8f0] sm:$0xff] }
  0xf2   :  { %4919 = vmatpush.bf16.msrb.mxu0 %v7713_v21  ;;  %v4693_v41 = vpop.f32.mrf.mxu2  ;;  %v4669_v44 = vpop.f32.mrf.mxu0 }
  0xf3   :  { %4932 = vmatpush.bf16.msrb.mxu1 %v7721_v22  ;;  %v4694_v42 = vadd.f32 %v4693_v41, %v4681_v36  ;;  %v4706_v43 = vpop.f32.mrf.mxu3  ;;  %v4682_v48 = vpop.f32.mrf.mxu1  ;;  %v7757_v41 = vld [vmem:[#allocation2 + $0x890] sm:$0xff]  ;;  %v7748_v44 = vld [vmem:[#allocation2 + $0x848] sm:$0xff] }
  0xf4   :  { %4945 = vmatpush.bf16.msrb.mxu2 %v7729_v23  ;;  %v7743_v23 = vld [vmem:[#allocation2 + $0x820] sm:$0xff]  ;;  %v7756_v48 = vld [vmem:[#allocation2 + $0x888] sm:$0xff] }
  0xf5   :  { %4958 = vmatpush.bf16.msrb.mxu3 %v7737_v24  ;;  %v8224_v45 = vadd.f32 %v4706_v43, %v4694_v42  ;;  %v7751_v24 = vld [vmem:[#allocation2 + $0x860] sm:$0xff]  ;;  %v7765_v42 = vld [vmem:[#allocation2 + $0x8d0] sm:$0xff]  ;;  %v7740_v43 = vld [vmem:[#allocation2 + $0x808] sm:$0xff] }
  0xf6   :  { %4920 = vmatpush.bf16.msrb.mxu0 %v7712_v25  ;;  %v272_v60 = vld.sshfl [vmem:[#allocation1 + $0x10] sm:$0xff pattern:$0x73625140] }
  0xf7   :  { %4933 = vmatpush.bf16.msrb.mxu1 %v7720_v26  ;;  %v7759_v26 = vld [vmem:[#allocation2 + $0x8a0] sm:$0xff] }
  0xf8   :  { %4946 = vmatpush.bf16.msrb.mxu2 %v7728_v27  ;;  %v7767_v27 = vld [vmem:[#allocation2 + $0x8e0] sm:$0xff] }
  0xf9   :  { %4959 = vmatpush.bf16.msrb.mxu3 %v7736_v28 }
  0xfa   :  { %4921 = vmatpush.bf16.msrb.mxu0 %v7711_v31  ;;  %v4695_v58 = vpop.f32.mrf.mxu2  ;;  %v7758_v31 = vld [vmem:[#allocation2 + $0x898] sm:$0xff] }
  0xfb   :  { %4934 = vmatpush.bf16.msrb.mxu1 %v7719_v32  ;;  %v4708_v59 = vpop.f32.mrf.mxu3  ;;  %v7766_v32 = vld [vmem:[#allocation2 + $0x8d8] sm:$0xff] }
  0xfc   :  { %4947 = vmatpush.bf16.msrb.mxu2 %v7727_v34  ;;  %v7786_v58 = vld [vmem:[#allocation2 + $0x978] sm:$0xff] }
  0xfd   :  { %4960 = vmatpush.bf16.msrb.mxu3 %v7735_v35  ;;  %v270_v59 = vld.sshfl [vmem:[#allocation1] sm:$0xff pattern:$0x73625140] }
  0xfe   :  { %4922 = vmatpush.bf16.msrb.mxu0 %v7710_v37 }
  0xff   :  { %4935 = vmatpush.bf16.msrb.mxu1 %v7718_v38  ;;  %v7741_v38 = vld [vmem:[#allocation2 + $0x810] sm:$0xff] }
 0x100   :  { %4948 = vmatpush.bf16.msrb.mxu2 %v7726_v39  ;;  %v7749_v39 = vld [vmem:[#allocation2 + $0x850] sm:$0xff] }
 0x101   :  { %4961 = vmatpush.bf16.msrb.mxu3 %v7734_v40 }
 0x102   :  { %4923 = vmatpush.bf16.msrb.mxu0 %v7709_v46  ;;  %v88_v46 = vld [vmem:[%s8395_s0 + $0xc8] sm:$0xff] }
 0x103   :  { %4936 = vmatpush.bf16.msrb.mxu1 %v7717_v47  ;;  %v104_v47 = vld [vmem:[%s8395_s0 + $0x148] sm:$0xff]  ;;  %267 = vst [vmem:[#allocation1 + $0x21] ss:$4 sm:$0xff] %v88_v46 }
 0x104   :  { %4949 = vmatpush.bf16.msrb.mxu2 %v7725_v49  ;;  %v7764_v49 = vld [vmem:[#allocation2 + $0x8c8] sm:$0xff]  ;;  %268 = vst [vmem:[#allocation1 + $0x22] ss:$4 sm:$0xff] %v104_v47  ;;  %v7779_v46 = vld [vmem:[#allocation2 + $0x940] sm:$0xff] }
 0x105   :  { %4962 = vmatpush.bf16.msrb.mxu3 %v7733_v50  ;;  %v7787_v47 = vld [vmem:[#allocation2 + $0x980] sm:$0xff] }
 0x106   :  { %4924 = vmatpush.bf16.msrb.mxu0 %v7708_v51 }
 0x107   :  { %4937 = vmatpush.bf16.msrb.mxu1 %v7716_v52  ;;  %v120_v52 = vld [vmem:[%s8395_s0 + $0x1c8] sm:$0xff] }
 0x108   :  { %4950 = vmatpush.bf16.msrb.mxu2 %v7724_v56  ;;  %v7763_v56 = vld [vmem:[#allocation2 + $0x8c0] sm:$0xff]  ;;  %269 = vst [vmem:[#allocation1 + $0x23] ss:$4 sm:$0xff] %v120_v52 }
 0x109   :  { %4963 = vmatpush.bf16.msrb.mxu3 %v7732_v57  ;;  %v7778_v57 = vld [vmem:[#allocation2 + $0x938] sm:$0xff] }
 0x10a   :  { %4925 = vmatpush.bf16.msrb.mxu0 %v7707_v61  ;;  %v4719_v21 = vpop.f32.mrf.mxu0  ;;  %v271_v61 = vld.sshfl [vmem:[#allocation1 + $0x8] sm:$0xff pattern:$0x73625140] }
 0x10b   :  { %4938 = vmatpush.bf16.msrb.mxu1 %v7715_v62  ;;  %v4720_v22 = vadd.f32 %v4719_v21, %v8224_v45  ;;  %v4732_v25 = vpop.f32.mrf.mxu1  ;;  %v72_v45 = vld [vmem:[%s8395_s0 + $0x48] sm:$0xff]  ;;  %v273_v62 = vld.sshfl [vmem:[#allocation1 + $0x18] sm:$0xff pattern:$0x73625140]  ;;  %v423_v3 = vpack.c.bf16 %v271_v61, %v271_v61  ;;  %v7774_v21 = vld [vmem:[#allocation2 + $0x918] sm:$0xff] }
 0x10c   :  { %4951 = vmatpush.bf16.msrb.mxu2 %v7723_v63  ;;  %266 = vst [vmem:[#allocation1 + $0x20] ss:$4 sm:$0xff] %v72_v45  ;;  %v7794_v63 = vld [vmem:[#allocation2 + $0x9b8] sm:$0xff]  ;;  %v425_v4 = vpack.c.bf16 %v273_v62, %v273_v62  ;;  %v7771_v45 = vld [vmem:[#allocation2 + $0x900] sm:$0xff]  ;;  %v7809_v61 = vld [vmem:[#allocation2 + $0xa30] sm:$0xff] }
 0x10d   :  { %4964 = vmatpush.bf16.msrb.mxu3 %v7731_v0  ;;  %4926 = vmatmul.bf16.vlgmr.msrb.gmra.mxu0 %v418_v9  ;;  %v4733_v28 = vadd.f32 %v4732_v25, %v4720_v22  ;;  %v7802_v0 = vld [vmem:[#allocation2 + $0x9f8] sm:$0xff]  ;;  %v7776_v9 = vld [vmem:[#allocation2 + $0x928] sm:$0xff]  ;;  %v7817_v62 = vld [vmem:[#allocation2 + $0xa70] sm:$0xff] }
 0x10e   :  { %4970 = vmatpush.bf16.msra.mxu0 %v7746_v1  ;;  %4939 = vmatmul.bf16.vlgmr.msrb.gmra.mxu1 %v419_v11  ;;  %v422_v1 = vpack.c.bf16 %v270_v59, %v270_v59  ;;  %v7792_v11 = vld [vmem:[#allocation2 + $0x9a8] sm:$0xff]  ;;  %v7782_v22 = vld [vmem:[#allocation2 + $0x958] sm:$0xff] }
 0x10f   :  { %4983 = vmatpush.bf16.msra.mxu1 %v7754_v2  ;;  %4952 = vmatmul.bf16.vlgmr.msrb.gmra.mxu2 %v420_v10  ;;  %v424_v2 = vpack.c.bf16 %v272_v60, %v272_v60  ;;  %v7784_v10 = vld [vmem:[#allocation2 + $0x968] sm:$0xff] }
 0x110   :  { %4996 = vmatpush.bf16.msra.mxu2 %v7762_v7  ;;  %4965 = vmatmul.bf16.vlgmr.msrb.gmra.mxu3 %v421_v12  ;;  %v7793_v7 = vld [vmem:[#allocation2 + $0x9b0] sm:$0xff]  ;;  %v7800_v12 = vld [vmem:[#allocation2 + $0x9e8] sm:$0xff] }
 0x111   :  { %5009 = vmatpush.bf16.msra.mxu3 %v7770_v8  ;;  %v7801_v8 = vld [vmem:[#allocation2 + $0x9f0] sm:$0xff] }
 0x112   :  { %4971 = vmatpush.bf16.msra.mxu0 %v7745_v13  ;;  %v4745_v33 = vpop.f32.mrf.mxu2  ;;  %v4721_v36 = vpop.f32.mrf.mxu0 }
 0x113   :  { %4984 = vmatpush.bf16.msra.mxu1 %v7753_v14  ;;  %v4746_v34 = vadd.f32 %v4745_v33, %v4733_v28  ;;  %v4758_v35 = vpop.f32.mrf.mxu3  ;;  %v4734_v40 = vpop.f32.mrf.mxu1  ;;  %v7789_v33 = vld [vmem:[#allocation2 + $0x990] sm:$0xff]  ;;  %v7780_v36 = vld [vmem:[#allocation2 + $0x948] sm:$0xff] }
 0x114   :  { %4997 = vmatpush.bf16.msra.mxu2 %v7761_v15  ;;  %v7775_v15 = vld [vmem:[#allocation2 + $0x920] sm:$0xff]  ;;  %v7788_v40 = vld [vmem:[#allocation2 + $0x988] sm:$0xff] }
 0x115   :  { %5010 = vmatpush.bf16.msra.mxu3 %v7769_v16  ;;  %v8239_v37 = vadd.f32 %v4758_v35, %v4746_v34  ;;  %v7783_v16 = vld [vmem:[#allocation2 + $0x960] sm:$0xff]  ;;  %v7797_v34 = vld [vmem:[#allocation2 + $0x9d0] sm:$0xff]  ;;  %v7772_v35 = vld [vmem:[#allocation2 + $0x908] sm:$0xff] }
 0x116   :  { %4972 = vmatpush.bf16.msra.mxu0 %v7744_v17  ;;  %v276_v52 = vld.sshfl [vmem:[#allocation1 + $0x30] sm:$0xff pattern:$0x73625140] }
 0x117   :  { %4985 = vmatpush.bf16.msra.mxu1 %v7752_v18  ;;  %v7791_v18 = vld [vmem:[#allocation2 + $0x9a0] sm:$0xff] }
 0x118   :  { %4998 = vmatpush.bf16.msra.mxu2 %v7760_v19  ;;  %v7799_v19 = vld [vmem:[#allocation2 + $0x9e0] sm:$0xff] }
 0x119   :  { %5011 = vmatpush.bf16.msra.mxu3 %v7768_v20 }
 0x11a   :  { %4973 = vmatpush.bf16.msra.mxu0 %v7743_v23  ;;  %v4747_v50 = vpop.f32.mrf.mxu2  ;;  %v7790_v23 = vld [vmem:[#allocation2 + $0x998] sm:$0xff] }
 0x11b   :  { %4986 = vmatpush.bf16.msra.mxu1 %v7751_v24  ;;  %v4760_v51 = vpop.f32.mrf.mxu3  ;;  %v7798_v24 = vld [vmem:[#allocation2 + $0x9d8] sm:$0xff] }
 0x11c   :  { %4999 = vmatpush.bf16.msra.mxu2 %v7759_v26  ;;  %v7818_v50 = vld [vmem:[#allocation2 + $0xa78] sm:$0xff] }
 0x11d   :  { %5012 = vmatpush.bf16.msra.mxu3 %v7767_v27  ;;  %v274_v51 = vld.sshfl [vmem:[#allocation1 + $0x20] sm:$0xff pattern:$0x73625140] }
 0x11e   :  { %4974 = vmatpush.bf16.msra.mxu0 %v7742_v29 }
 0x11f   :  { %4987 = vmatpush.bf16.msra.mxu1 %v7750_v30  ;;  %v7773_v30 = vld [vmem:[#allocation2 + $0x910] sm:$0xff] }
 0x120   :  { %5000 = vmatpush.bf16.msra.mxu2 %v7758_v31  ;;  %v7781_v31 = vld [vmem:[#allocation2 + $0x950] sm:$0xff] }
 0x121   :  { %5013 = vmatpush.bf16.msra.mxu3 %v7766_v32 }
 0x122   :  { %4975 = vmatpush.bf16.msra.mxu0 %v7741_v38  ;;  %v89_v38 = vld [vmem:[%s8395_s0 + $0xd0] sm:$0xff] }
 0x123   :  { %4988 = vmatpush.bf16.msra.mxu1 %v7749_v39  ;;  %v105_v39 = vld [vmem:[%s8395_s0 + $0x150] sm:$0xff]  ;;  %279 = vst [vmem:[#allocation1 + $0x1] ss:$4 sm:$0xff] %v89_v38  ;;  %v7811_v38 = vld [vmem:[#allocation2 + $0xa40] sm:$0xff] }
 0x124   :  { %5001 = vmatpush.bf16.msra.mxu2 %v7757_v41  ;;  %v7796_v41 = vld [vmem:[#allocation2 + $0x9c8] sm:$0xff]  ;;  %280 = vst [vmem:[#allocation1 + $0x2] ss:$4 sm:$0xff] %v105_v39  ;;  %v7819_v39 = vld [vmem:[#allocation2 + $0xa80] sm:$0xff] }
 0x125   :  { %5014 = vmatpush.bf16.msra.mxu3 %v7765_v42 }
 0x126   :  { %4976 = vmatpush.bf16.msra.mxu0 %v7740_v43 }
 0x127   :  { %4989 = vmatpush.bf16.msra.mxu1 %v7748_v44  ;;  %v121_v44 = vld [vmem:[%s8395_s0 + $0x1d0] sm:$0xff] }
 0x128   :  { %5002 = vmatpush.bf16.msra.mxu2 %v7756_v48  ;;  %v7795_v48 = vld [vmem:[#allocation2 + $0x9c0] sm:$0xff]  ;;  %281 = vst [vmem:[#allocation1 + $0x3] ss:$4 sm:$0xff] %v121_v44 }
 0x129   :  { %5015 = vmatpush.bf16.msra.mxu3 %v7764_v49  ;;  %v7810_v49 = vld [vmem:[#allocation2 + $0xa38] sm:$0xff] }
 0x12a   :  { %4977 = vmatpush.bf16.msra.mxu0 %v7739_v53  ;;  %v4771_v13 = vpop.f32.mrf.mxu0  ;;  %v275_v53 = vld.sshfl [vmem:[#allocation1 + $0x28] sm:$0xff pattern:$0x73625140] }
 0x12b   :  { %4990 = vmatpush.bf16.msra.mxu1 %v7747_v54  ;;  %v4772_v14 = vadd.f32 %v4771_v13, %v8239_v37  ;;  %v4784_v17 = vpop.f32.mrf.mxu1  ;;  %v73_v37 = vld [vmem:[%s8395_s0 + $0x50] sm:$0xff]  ;;  %v277_v54 = vld.sshfl [vmem:[#allocation1 + $0x38] sm:$0xff pattern:$0x73625140]  ;;  %v427_v59 = vpack.c.bf16 %v275_v53, %v275_v53  ;;  %v7806_v13 = vld [vmem:[#allocation2 + $0xa18] sm:$0xff] }
 0x12c   :  { %5003 = vmatpush.bf16.msra.mxu2 %v7755_v55  ;;  %278 = vst [vmem:[#allocation1] ss:$4 sm:$0xff] %v73_v37  ;;  %v7826_v55 = vld [vmem:[#allocation2 + $0xab8] sm:$0xff]  ;;  %v429_v60 = vpack.c.bf16 %v277_v54, %v277_v54  ;;  %v7803_v37 = vld [vmem:[#allocation2 + $0xa00] sm:$0xff]  ;;  %v7841_v53 = vld [vmem:[#allocation2 + $0xb30] sm:$0xff] }
 0x12d   :  { %5016 = vmatpush.bf16.msra.mxu3 %v7763_v56  ;;  %4978 = vmatmul.bf16.vlgmr.msra.gmra.mxu0 %v422_v1  ;;  %v4785_v20 = vadd.f32 %v4784_v17, %v4772_v14  ;;  %v7834_v56 = vld [vmem:[#allocation2 + $0xaf8] sm:$0xff]  ;;  %v7808_v1 = vld [vmem:[#allocation2 + $0xa28] sm:$0xff]  ;;  %v7849_v54 = vld [vmem:[#allocation2 + $0xb70] sm:$0xff] }
 0x12e   :  { %5022 = vmatpush.bf16.msrb.mxu0 %v7778_v57  ;;  %4991 = vmatmul.bf16.vlgmr.msra.gmra.mxu1 %v423_v3  ;;  %v426_v57 = vpack.c.bf16 %v274_v51, %v274_v51  ;;  %v7824_v3 = vld [vmem:[#allocation2 + $0xaa8] sm:$0xff]  ;;  %v7814_v14 = vld [vmem:[#allocation2 + $0xa58] sm:$0xff] }
 0x12f   :  { %5035 = vmatpush.bf16.msrb.mxu1 %v7786_v58  ;;  %5004 = vmatmul.bf16.vlgmr.msra.gmra.mxu2 %v424_v2  ;;  %v428_v58 = vpack.c.bf16 %v276_v52, %v276_v52  ;;  %v7816_v2 = vld [vmem:[#allocation2 + $0xa68] sm:$0xff] }
 0x130   :  { %5048 = vmatpush.bf16.msrb.mxu2 %v7794_v63  ;;  %5017 = vmatmul.bf16.vlgmr.msra.gmra.mxu3 %v425_v4  ;;  %v7825_v63 = vld [vmem:[#allocation2 + $0xab0] sm:$0xff]  ;;  %v7832_v4 = vld [vmem:[#allocation2 + $0xae8] sm:$0xff] }
 0x131   :  { %5061 = vmatpush.bf16.msrb.mxu3 %v7802_v0  ;;  %v7833_v0 = vld [vmem:[#allocation2 + $0xaf0] sm:$0xff] }
 0x132   :  { %5023 = vmatpush.bf16.msrb.mxu0 %v7777_v5  ;;  %v4797_v25 = vpop.f32.mrf.mxu2  ;;  %v4773_v28 = vpop.f32.mrf.mxu0 }
 0x133   :  { %5036 = vmatpush.bf16.msrb.mxu1 %v7785_v6  ;;  %v4798_v26 = vadd.f32 %v4797_v25, %v4785_v20  ;;  %v4810_v27 = vpop.f32.mrf.mxu3  ;;  %v4786_v32 = vpop.f32.mrf.mxu1  ;;  %v7821_v25 = vld [vmem:[#allocation2 + $0xa90] sm:$0xff]  ;;  %v7812_v28 = vld [vmem:[#allocation2 + $0xa48] sm:$0xff] }
 0x134   :  { %5049 = vmatpush.bf16.msrb.mxu2 %v7793_v7  ;;  %v7807_v7 = vld [vmem:[#allocation2 + $0xa20] sm:$0xff]  ;;  %v7820_v32 = vld [vmem:[#allocation2 + $0xa88] sm:$0xff] }
 0x135   :  { %5062 = vmatpush.bf16.msrb.mxu3 %v7801_v8  ;;  %v8254_v29 = vadd.f32 %v4810_v27, %v4798_v26  ;;  %v7815_v8 = vld [vmem:[#allocation2 + $0xa60] sm:$0xff]  ;;  %v7829_v26 = vld [vmem:[#allocation2 + $0xad0] sm:$0xff]  ;;  %v7804_v27 = vld [vmem:[#allocation2 + $0xa08] sm:$0xff] }
 0x136   :  { %5024 = vmatpush.bf16.msrb.mxu0 %v7776_v9  ;;  %v288_v44 = vld.sshfl [vmem:[#allocation1 + $0x10] sm:$0xff pattern:$0x73625140] }
 0x137   :  { %5037 = vmatpush.bf16.msrb.mxu1 %v7784_v10  ;;  %v7823_v10 = vld [vmem:[#allocation2 + $0xaa0] sm:$0xff] }
 0x138   :  { %5050 = vmatpush.bf16.msrb.mxu2 %v7792_v11  ;;  %v7831_v11 = vld [vmem:[#allocation2 + $0xae0] sm:$0xff] }
 0x139   :  { %5063 = vmatpush.bf16.msrb.mxu3 %v7800_v12 }
 0x13a   :  { %5025 = vmatpush.bf16.msrb.mxu0 %v7775_v15  ;;  %v4799_v42 = vpop.f32.mrf.mxu2  ;;  %v7822_v15 = vld [vmem:[#allocation2 + $0xa98] sm:$0xff] }
 0x13b   :  { %5038 = vmatpush.bf16.msrb.mxu1 %v7783_v16  ;;  %v4812_v43 = vpop.f32.mrf.mxu3  ;;  %v7830_v16 = vld [vmem:[#allocation2 + $0xad8] sm:$0xff] }
 0x13c   :  { %5051 = vmatpush.bf16.msrb.mxu2 %v7791_v18  ;;  %v7850_v42 = vld [vmem:[#allocation2 + $0xb78] sm:$0xff] }
 0x13d   :  { %5064 = vmatpush.bf16.msrb.mxu3 %v7799_v19  ;;  %v286_v43 = vld.sshfl [vmem:[#allocation1] sm:$0xff pattern:$0x73625140] }
 0x13e   :  { %5026 = vmatpush.bf16.msrb.mxu0 %v7774_v21 }
 0x13f   :  { %5039 = vmatpush.bf16.msrb.mxu1 %v7782_v22  ;;  %v7805_v22 = vld [vmem:[#allocation2 + $0xa10] sm:$0xff] }
 0x140   :  { %5052 = vmatpush.bf16.msrb.mxu2 %v7790_v23  ;;  %v7813_v23 = vld [vmem:[#allocation2 + $0xa50] sm:$0xff] }
 0x141   :  { %5065 = vmatpush.bf16.msrb.mxu3 %v7798_v24 }
 0x142   :  { %5027 = vmatpush.bf16.msrb.mxu0 %v7773_v30  ;;  %v90_v30 = vld [vmem:[%s8395_s0 + $0xd8] sm:$0xff] }
 0x143   :  { %5040 = vmatpush.bf16.msrb.mxu1 %v7781_v31  ;;  %v106_v31 = vld [vmem:[%s8395_s0 + $0x158] sm:$0xff]  ;;  %283 = vst [vmem:[#allocation1 + $0x21] ss:$4 sm:$0xff] %v90_v30  ;;  %v7843_v30 = vld [vmem:[#allocation2 + $0xb40] sm:$0xff] }
 0x144   :  { %5053 = vmatpush.bf16.msrb.mxu2 %v7789_v33  ;;  %v7828_v33 = vld [vmem:[#allocation2 + $0xac8] sm:$0xff]  ;;  %284 = vst [vmem:[#allocation1 + $0x22] ss:$4 sm:$0xff] %v106_v31  ;;  %v7851_v31 = vld [vmem:[#allocation2 + $0xb80] sm:$0xff] }
 0x145   :  { %5066 = vmatpush.bf16.msrb.mxu3 %v7797_v34 }
 0x146   :  { %5028 = vmatpush.bf16.msrb.mxu0 %v7772_v35 }
 0x147   :  { %5041 = vmatpush.bf16.msrb.mxu1 %v7780_v36  ;;  %v122_v36 = vld [vmem:[%s8395_s0 + $0x1d8] sm:$0xff] }
 0x148   :  { %5054 = vmatpush.bf16.msrb.mxu2 %v7788_v40  ;;  %v7827_v40 = vld [vmem:[#allocation2 + $0xac0] sm:$0xff]  ;;  %285 = vst [vmem:[#allocation1 + $0x23] ss:$4 sm:$0xff] %v122_v36 }
 0x149   :  { %5067 = vmatpush.bf16.msrb.mxu3 %v7796_v41  ;;  %v7842_v41 = vld [vmem:[#allocation2 + $0xb38] sm:$0xff] }
 0x14a   :  { %5029 = vmatpush.bf16.msrb.mxu0 %v7771_v45  ;;  %v4823_v5 = vpop.f32.mrf.mxu0  ;;  %v287_v45 = vld.sshfl [vmem:[#allocation1 + $0x8] sm:$0xff pattern:$0x73625140] }
 0x14b   :  { %5042 = vmatpush.bf16.msrb.mxu1 %v7779_v46  ;;  %v4824_v6 = vadd.f32 %v4823_v5, %v8254_v29  ;;  %v4836_v9 = vpop.f32.mrf.mxu1  ;;  %v74_v29 = vld [vmem:[%s8395_s0 + $0x58] sm:$0xff]  ;;  %v431_v51 = vpack.c.bf16 %v287_v45, %v287_v45  ;;  %v7838_v5 = vld [vmem:[#allocation2 + $0xb18] sm:$0xff] }
 0x14c   :  { %5055 = vmatpush.bf16.msrb.mxu2 %v7787_v47  ;;  %282 = vst [vmem:[#allocation1 + $0x20] ss:$4 sm:$0xff] %v74_v29  ;;  %v289_v46 = vld.sshfl [vmem:[#allocation1 + $0x18] sm:$0xff pattern:$0x73625140]  ;;  %v7858_v47 = vld [vmem:[#allocation2 + $0xbb8] sm:$0xff] }
 0x14d   :  { %5068 = vmatpush.bf16.msrb.mxu3 %v7795_v48  ;;  %5030 = vmatmul.bf16.vlgmr.msrb.gmra.mxu0 %v426_v57  ;;  %v4837_v12 = vadd.f32 %v4836_v9, %v4824_v6  ;;  %v7866_v48 = vld [vmem:[#allocation2 + $0xbf8] sm:$0xff]  ;;  %v433_v52 = vpack.c.bf16 %v289_v46, %v289_v46  ;;  %v7840_v57 = vld [vmem:[#allocation2 + $0xb28] sm:$0xff]  ;;  %v7835_v29 = vld [vmem:[#allocation2 + $0xb00] sm:$0xff] }
 0x14e   :  { %5074 = vmatpush.bf16.msra.mxu0 %v7810_v49  ;;  %5043 = vmatmul.bf16.vlgmr.msrb.gmra.mxu1 %v427_v59  ;;  %v430_v49 = vpack.c.bf16 %v286_v43, %v286_v43  ;;  %v7856_v59 = vld [vmem:[#allocation2 + $0xba8] sm:$0xff]  ;;  %v7846_v6 = vld [vmem:[#allocation2 + $0xb58] sm:$0xff]  ;;  %v7873_v45 = vld [vmem:[#allocation2 + $0xc30] sm:$0xff] }
 0x14f   :  { %5087 = vmatpush.bf16.msra.mxu1 %v7818_v50  ;;  %5056 = vmatmul.bf16.vlgmr.msrb.gmra.mxu2 %v428_v58  ;;  %v432_v50 = vpack.c.bf16 %v288_v44, %v288_v44  ;;  %v7848_v58 = vld [vmem:[#allocation2 + $0xb68] sm:$0xff]  ;;  %v7881_v46 = vld [vmem:[#allocation2 + $0xc70] sm:$0xff] }
 0x150   :  { %5100 = vmatpush.bf16.msra.mxu2 %v7826_v55  ;;  %5069 = vmatmul.bf16.vlgmr.msrb.gmra.mxu3 %v429_v60  ;;  %v7857_v55 = vld [vmem:[#allocation2 + $0xbb0] sm:$0xff]  ;;  %v7864_v60 = vld [vmem:[#allocation2 + $0xbe8] sm:$0xff] }
 0x151   :  { %5113 = vmatpush.bf16.msra.mxu3 %v7834_v56  ;;  %v7865_v56 = vld [vmem:[#allocation2 + $0xbf0] sm:$0xff] }
 0x152   :  { %5075 = vmatpush.bf16.msra.mxu0 %v7809_v61  ;;  %v4849_v17 = vpop.f32.mrf.mxu2  ;;  %v4825_v20 = vpop.f32.mrf.mxu0 }
 0x153   :  { %5088 = vmatpush.bf16.msra.mxu1 %v7817_v62  ;;  %v4850_v18 = vadd.f32 %v4849_v17, %v4837_v12  ;;  %v4862_v19 = vpop.f32.mrf.mxu3  ;;  %v4838_v24 = vpop.f32.mrf.mxu1  ;;  %v7853_v17 = vld [vmem:[#allocation2 + $0xb90] sm:$0xff]  ;;  %v7844_v20 = vld [vmem:[#allocation2 + $0xb48] sm:$0xff] }
 0x154   :  { %5101 = vmatpush.bf16.msra.mxu2 %v7825_v63  ;;  %v7839_v63 = vld [vmem:[#allocation2 + $0xb20] sm:$0xff]  ;;  %v7852_v24 = vld [vmem:[#allocation2 + $0xb88] sm:$0xff] }
 0x155   :  { %5114 = vmatpush.bf16.msra.mxu3 %v7833_v0  ;;  %v8269_v21 = vadd.f32 %v4862_v19, %v4850_v18  ;;  %v7847_v0 = vld [vmem:[#allocation2 + $0xb60] sm:$0xff]  ;;  %v7861_v18 = vld [vmem:[#allocation2 + $0xbd0] sm:$0xff]  ;;  %v7836_v19 = vld [vmem:[#allocation2 + $0xb08] sm:$0xff] }
 0x156   :  { %5076 = vmatpush.bf16.msra.mxu0 %v7808_v1  ;;  %v292_v36 = vld.sshfl [vmem:[#allocation1 + $0x30] sm:$0xff pattern:$0x73625140] }
 0x157   :  { %5089 = vmatpush.bf16.msra.mxu1 %v7816_v2  ;;  %v7855_v2 = vld [vmem:[#allocation2 + $0xba0] sm:$0xff] }
 0x158   :  { %5102 = vmatpush.bf16.msra.mxu2 %v7824_v3  ;;  %v7863_v3 = vld [vmem:[#allocation2 + $0xbe0] sm:$0xff] }
 0x159   :  { %5115 = vmatpush.bf16.msra.mxu3 %v7832_v4 }
 0x15a   :  { %5077 = vmatpush.bf16.msra.mxu0 %v7807_v7  ;;  %v4851_v34 = vpop.f32.mrf.mxu2  ;;  %v7854_v7 = vld [vmem:[#allocation2 + $0xb98] sm:$0xff] }
 0x15b   :  { %5090 = vmatpush.bf16.msra.mxu1 %v7815_v8  ;;  %v4864_v35 = vpop.f32.mrf.mxu3  ;;  %v7862_v8 = vld [vmem:[#allocation2 + $0xbd8] sm:$0xff] }
 0x15c   :  { %5103 = vmatpush.bf16.msra.mxu2 %v7823_v10  ;;  %v7882_v34 = vld [vmem:[#allocation2 + $0xc78] sm:$0xff] }
 0x15d   :  { %5116 = vmatpush.bf16.msra.mxu3 %v7831_v11  ;;  %v290_v35 = vld.sshfl [vmem:[#allocation1 + $0x20] sm:$0xff pattern:$0x73625140] }
 0x15e   :  { %5078 = vmatpush.bf16.msra.mxu0 %v7806_v13 }
 0x15f   :  { %5091 = vmatpush.bf16.msra.mxu1 %v7814_v14  ;;  %v7837_v14 = vld [vmem:[#allocation2 + $0xb10] sm:$0xff] }
 0x160   :  { %5104 = vmatpush.bf16.msra.mxu2 %v7822_v15  ;;  %v7845_v15 = vld [vmem:[#allocation2 + $0xb50] sm:$0xff] }
 0x161   :  { %5117 = vmatpush.bf16.msra.mxu3 %v7830_v16 }
 0x162   :  { %5079 = vmatpush.bf16.msra.mxu0 %v7805_v22  ;;  %v91_v22 = vld [vmem:[%s8395_s0 + $0xe0] sm:$0xff] }
 0x163   :  { %5092 = vmatpush.bf16.msra.mxu1 %v7813_v23  ;;  %v107_v23 = vld [vmem:[%s8395_s0 + $0x160] sm:$0xff]  ;;  %295 = vst [vmem:[#allocation1 + $0x1] ss:$4 sm:$0xff] %v91_v22  ;;  %v7875_v22 = vld [vmem:[#allocation2 + $0xc40] sm:$0xff] }
 0x164   :  { %5105 = vmatpush.bf16.msra.mxu2 %v7821_v25  ;;  %v7860_v25 = vld [vmem:[#allocation2 + $0xbc8] sm:$0xff]  ;;  %296 = vst [vmem:[#allocation1 + $0x2] ss:$4 sm:$0xff] %v107_v23  ;;  %v7883_v23 = vld [vmem:[#allocation2 + $0xc80] sm:$0xff] }
 0x165   :  { %5118 = vmatpush.bf16.msra.mxu3 %v7829_v26 }
 0x166   :  { %5080 = vmatpush.bf16.msra.mxu0 %v7804_v27 }
 0x167   :  { %5093 = vmatpush.bf16.msra.mxu1 %v7812_v28  ;;  %v123_v28 = vld [vmem:[%s8395_s0 + $0x1e0] sm:$0xff] }
 0x168   :  { %5106 = vmatpush.bf16.msra.mxu2 %v7820_v32  ;;  %v7859_v32 = vld [vmem:[#allocation2 + $0xbc0] sm:$0xff]  ;;  %297 = vst [vmem:[#allocation1 + $0x3] ss:$4 sm:$0xff] %v123_v28 }
 0x169   :  { %5119 = vmatpush.bf16.msra.mxu3 %v7828_v33  ;;  %v7874_v33 = vld [vmem:[#allocation2 + $0xc38] sm:$0xff] }
 0x16a   :  { %5081 = vmatpush.bf16.msra.mxu0 %v7803_v37  ;;  %v4875_v61 = vpop.f32.mrf.mxu0  ;;  %v291_v37 = vld.sshfl [vmem:[#allocation1 + $0x28] sm:$0xff pattern:$0x73625140] }
 0x16b   :  { %5094 = vmatpush.bf16.msra.mxu1 %v7811_v38  ;;  %v4876_v62 = vadd.f32 %v4875_v61, %v8269_v21  ;;  %v4888_v1 = vpop.f32.mrf.mxu1  ;;  %v75_v21 = vld [vmem:[%s8395_s0 + $0x60] sm:$0xff]  ;;  %v293_v38 = vld.sshfl [vmem:[#allocation1 + $0x38] sm:$0xff pattern:$0x73625140]  ;;  %v435_v43 = vpack.c.bf16 %v291_v37, %v291_v37 }
 0x16c   :  { %5107 = vmatpush.bf16.msra.mxu2 %v7819_v39  ;;  %294 = vst [vmem:[#allocation1] ss:$4 sm:$0xff] %v75_v21  ;;  %v7890_v39 = vld [vmem:[#allocation2 + $0xcb8] sm:$0xff]  ;;  %v437_v44 = vpack.c.bf16 %v293_v38, %v293_v38  ;;  %v7867_v21 = vld [vmem:[#allocation2 + $0xc00] sm:$0xff]  ;;  %v7905_v37 = vld [vmem:[#allocation2 + $0xd30] sm:$0xff] }
 0x16d   :  { %5120 = vmatpush.bf16.msra.mxu3 %v7827_v40  ;;  %5082 = vmatmul.bf16.vlgmr.msra.gmra.mxu0 %v430_v49  ;;  %v4889_v4 = vadd.f32 %v4888_v1, %v4876_v62  ;;  %v7898_v40 = vld [vmem:[#allocation2 + $0xcf8] sm:$0xff]  ;;  %v7872_v49 = vld [vmem:[#allocation2 + $0xc28] sm:$0xff]  ;;  %v7913_v38 = vld [vmem:[#allocation2 + $0xd70] sm:$0xff] }
 0x16e   :  { %5126 = vmatpush.bf16.msrb.mxu0 %v7842_v41  ;;  %5095 = vmatmul.bf16.vlgmr.msra.gmra.mxu1 %v431_v51  ;;  %v434_v41 = vpack.c.bf16 %v290_v35, %v290_v35  ;;  %v7888_v51 = vld [vmem:[#allocation2 + $0xca8] sm:$0xff]  ;;  %v7870_v61 = vld [vmem:[#allocation2 + $0xc18] sm:$0xff] }
 0x16f   :  { %5139 = vmatpush.bf16.msrb.mxu1 %v7850_v42  ;;  %5108 = vmatmul.bf16.vlgmr.msra.gmra.mxu2 %v432_v50  ;;  %v436_v42 = vpack.c.bf16 %v292_v36, %v292_v36  ;;  %v7880_v50 = vld [vmem:[#allocation2 + $0xc68] sm:$0xff]  ;;  %v7878_v62 = vld [vmem:[#allocation2 + $0xc58] sm:$0xff] }
 0x170   :  { %5152 = vmatpush.bf16.msrb.mxu2 %v7858_v47  ;;  %5121 = vmatmul.bf16.vlgmr.msra.gmra.mxu3 %v433_v52  ;;  %v7889_v47 = vld [vmem:[#allocation2 + $0xcb0] sm:$0xff]  ;;  %v7896_v52 = vld [vmem:[#allocation2 + $0xce8] sm:$0xff] }
 0x171   :  { %5165 = vmatpush.bf16.msrb.mxu3 %v7866_v48  ;;  %v7897_v48 = vld [vmem:[#allocation2 + $0xcf0] sm:$0xff] }
 0x172   :  { %5127 = vmatpush.bf16.msrb.mxu0 %v7841_v53  ;;  %v4901_v9 = vpop.f32.mrf.mxu2  ;;  %v4877_v12 = vpop.f32.mrf.mxu0 }
 0x173   :  { %5140 = vmatpush.bf16.msrb.mxu1 %v7849_v54  ;;  %v4902_v10 = vadd.f32 %v4901_v9, %v4889_v4  ;;  %v4914_v11 = vpop.f32.mrf.mxu3  ;;  %v4890_v16 = vpop.f32.mrf.mxu1  ;;  %v7885_v9 = vld [vmem:[#allocation2 + $0xc90] sm:$0xff]  ;;  %v7876_v12 = vld [vmem:[#allocation2 + $0xc48] sm:$0xff] }
 0x174   :  { %5153 = vmatpush.bf16.msrb.mxu2 %v7857_v55  ;;  %v7871_v55 = vld [vmem:[#allocation2 + $0xc20] sm:$0xff]  ;;  %v7884_v16 = vld [vmem:[#allocation2 + $0xc88] sm:$0xff] }
 0x175   :  { %5166 = vmatpush.bf16.msrb.mxu3 %v7865_v56  ;;  %v8284_v13 = vadd.f32 %v4914_v11, %v4902_v10  ;;  %v7879_v56 = vld [vmem:[#allocation2 + $0xc60] sm:$0xff]  ;;  %v7893_v10 = vld [vmem:[#allocation2 + $0xcd0] sm:$0xff]  ;;  %v7868_v11 = vld [vmem:[#allocation2 + $0xc08] sm:$0xff] }
 0x176   :  { %5128 = vmatpush.bf16.msrb.mxu0 %v7840_v57  ;;  %v304_v28 = vld.sshfl [vmem:[#allocation1 + $0x10] sm:$0xff pattern:$0x73625140] }
 0x177   :  { %5141 = vmatpush.bf16.msrb.mxu1 %v7848_v58  ;;  %v7887_v58 = vld [vmem:[#allocation2 + $0xca0] sm:$0xff] }
 0x178   :  { %5154 = vmatpush.bf16.msrb.mxu2 %v7856_v59  ;;  %v7895_v59 = vld [vmem:[#allocation2 + $0xce0] sm:$0xff] }
 0x179   :  { %5167 = vmatpush.bf16.msrb.mxu3 %v7864_v60 }
 0x17a   :  { %5129 = vmatpush.bf16.msrb.mxu0 %v7839_v63  ;;  %v4903_v26 = vpop.f32.mrf.mxu2  ;;  %v7886_v63 = vld [vmem:[#allocation2 + $0xc98] sm:$0xff] }
 0x17b   :  { %5142 = vmatpush.bf16.msrb.mxu1 %v7847_v0  ;;  %v4916_v27 = vpop.f32.mrf.mxu3  ;;  %v7894_v0 = vld [vmem:[#allocation2 + $0xcd8] sm:$0xff] }
 0x17c   :  { %5155 = vmatpush.bf16.msrb.mxu2 %v7855_v2  ;;  %v7914_v26 = vld [vmem:[#allocation2 + $0xd78] sm:$0xff] }
 0x17d   :  { %5168 = vmatpush.bf16.msrb.mxu3 %v7863_v3  ;;  %v302_v27 = vld.sshfl [vmem:[#allocation1] sm:$0xff pattern:$0x73625140] }
 0x17e   :  { %5130 = vmatpush.bf16.msrb.mxu0 %v7838_v5 }
 0x17f   :  { %5143 = vmatpush.bf16.msrb.mxu1 %v7846_v6  ;;  %v7869_v6 = vld [vmem:[#allocation2 + $0xc10] sm:$0xff] }
 0x180   :  { %5156 = vmatpush.bf16.msrb.mxu2 %v7854_v7  ;;  %v7877_v7 = vld [vmem:[#allocation2 + $0xc50] sm:$0xff] }
 0x181   :  { %5169 = vmatpush.bf16.msrb.mxu3 %v7862_v8 }
 0x182   :  { %5131 = vmatpush.bf16.msrb.mxu0 %v7837_v14  ;;  %v92_v14 = vld [vmem:[%s8395_s0 + $0xe8] sm:$0xff] }
 0x183   :  { %5144 = vmatpush.bf16.msrb.mxu1 %v7845_v15  ;;  %v108_v15 = vld [vmem:[%s8395_s0 + $0x168] sm:$0xff]  ;;  %299 = vst [vmem:[#allocation1 + $0x21] ss:$4 sm:$0xff] %v92_v14 }
 0x184   :  { %5157 = vmatpush.bf16.msrb.mxu2 %v7853_v17  ;;  %v7892_v17 = vld [vmem:[#allocation2 + $0xcc8] sm:$0xff]  ;;  %300 = vst [vmem:[#allocation1 + $0x22] ss:$4 sm:$0xff] %v108_v15  ;;  %v7907_v14 = vld [vmem:[#allocation2 + $0xd40] sm:$0xff] }
 0x185   :  { %5170 = vmatpush.bf16.msrb.mxu3 %v7861_v18  ;;  %v7915_v15 = vld [vmem:[#allocation2 + $0xd80] sm:$0xff] }
 0x186   :  { %5132 = vmatpush.bf16.msrb.mxu0 %v7836_v19 }
 0x187   :  { %5145 = vmatpush.bf16.msrb.mxu1 %v7844_v20  ;;  %v124_v20 = vld [vmem:[%s8395_s0 + $0x1e8] sm:$0xff] }
 0x188   :  { %5158 = vmatpush.bf16.msrb.mxu2 %v7852_v24  ;;  %v7891_v24 = vld [vmem:[#allocation2 + $0xcc0] sm:$0xff]  ;;  %301 = vst [vmem:[#allocation1 + $0x23] ss:$4 sm:$0xff] %v124_v20 }
 0x189   :  { %5171 = vmatpush.bf16.msrb.mxu3 %v7860_v25  ;;  %v7906_v25 = vld [vmem:[#allocation2 + $0xd38] sm:$0xff] }
 0x18a   :  { %5133 = vmatpush.bf16.msrb.mxu0 %v7835_v29  ;;  %v4927_v53 = vpop.f32.mrf.mxu0  ;;  %v303_v29 = vld.sshfl [vmem:[#allocation1 + $0x8] sm:$0xff pattern:$0x73625140] }
 0x18b   :  { %5146 = vmatpush.bf16.msrb.mxu1 %v7843_v30  ;;  %v4928_v54 = vadd.f32 %v4927_v53, %v8284_v13  ;;  %v4940_v57 = vpop.f32.mrf.mxu1  ;;  %v76_v13 = vld [vmem:[%s8395_s0 + $0x68] sm:$0xff]  ;;  %v305_v30 = vld.sshfl [vmem:[#allocation1 + $0x18] sm:$0xff pattern:$0x73625140]  ;;  %v439_v35 = vpack.c.bf16 %v303_v29, %v303_v29  ;;  %v7902_v53 = vld [vmem:[#allocation2 + $0xd18] sm:$0xff] }
 0x18c   :  { %5159 = vmatpush.bf16.msrb.mxu2 %v7851_v31  ;;  %298 = vst [vmem:[#allocation1 + $0x20] ss:$4 sm:$0xff] %v76_v13  ;;  %v7922_v31 = vld [vmem:[#allocation2 + $0xdb8] sm:$0xff]  ;;  %v441_v36 = vpack.c.bf16 %v305_v30, %v305_v30  ;;  %v7899_v13 = vld [vmem:[#allocation2 + $0xd00] sm:$0xff]  ;;  %v7937_v29 = vld [vmem:[#allocation2 + $0xe30] sm:$0xff] }
 0x18d   :  { %5172 = vmatpush.bf16.msrb.mxu3 %v7859_v32  ;;  %5134 = vmatmul.bf16.vlgmr.msrb.gmra.mxu0 %v434_v41  ;;  %v4941_v60 = vadd.f32 %v4940_v57, %v4928_v54  ;;  %v7930_v32 = vld [vmem:[#allocation2 + $0xdf8] sm:$0xff]  ;;  %v7904_v41 = vld [vmem:[#allocation2 + $0xd28] sm:$0xff]  ;;  %v7945_v30 = vld [vmem:[#allocation2 + $0xe70] sm:$0xff] }
 0x18e   :  { %5178 = vmatpush.bf16.msra.mxu0 %v7874_v33  ;;  %5147 = vmatmul.bf16.vlgmr.msrb.gmra.mxu1 %v435_v43  ;;  %v438_v33 = vpack.c.bf16 %v302_v27, %v302_v27  ;;  %v7920_v43 = vld [vmem:[#allocation2 + $0xda8] sm:$0xff]  ;;  %v7910_v54 = vld [vmem:[#allocation2 + $0xd58] sm:$0xff] }
 0x18f   :  { %5191 = vmatpush.bf16.msra.mxu1 %v7882_v34  ;;  %5160 = vmatmul.bf16.vlgmr.msrb.gmra.mxu2 %v436_v42  ;;  %v440_v34 = vpack.c.bf16 %v304_v28, %v304_v28  ;;  %v7912_v42 = vld [vmem:[#allocation2 + $0xd68] sm:$0xff] }
 0x190   :  { %5204 = vmatpush.bf16.msra.mxu2 %v7890_v39  ;;  %5173 = vmatmul.bf16.vlgmr.msrb.gmra.mxu3 %v437_v44  ;;  %v7921_v39 = vld [vmem:[#allocation2 + $0xdb0] sm:$0xff]  ;;  %v7928_v44 = vld [vmem:[#allocation2 + $0xde8] sm:$0xff] }
 0x191   :  { %5217 = vmatpush.bf16.msra.mxu3 %v7898_v40  ;;  %v7929_v40 = vld [vmem:[#allocation2 + $0xdf0] sm:$0xff] }
 0x192   :  { %5179 = vmatpush.bf16.msra.mxu0 %v7873_v45  ;;  %v4953_v1 = vpop.f32.mrf.mxu2  ;;  %v4929_v4 = vpop.f32.mrf.mxu0 }
 0x193   :  { %5192 = vmatpush.bf16.msra.mxu1 %v7881_v46  ;;  %v4954_v2 = vadd.f32 %v4953_v1, %v4941_v60  ;;  %v4966_v3 = vpop.f32.mrf.mxu3  ;;  %v4942_v8 = vpop.f32.mrf.mxu1  ;;  %v7917_v1 = vld [vmem:[#allocation2 + $0xd90] sm:$0xff]  ;;  %v7908_v4 = vld [vmem:[#allocation2 + $0xd48] sm:$0xff] }
 0x194   :  { %5205 = vmatpush.bf16.msra.mxu2 %v7889_v47  ;;  %v7903_v47 = vld [vmem:[#allocation2 + $0xd20] sm:$0xff]  ;;  %v7916_v8 = vld [vmem:[#allocation2 + $0xd88] sm:$0xff] }
 0x195   :  { %5218 = vmatpush.bf16.msra.mxu3 %v7897_v48  ;;  %v8299_v5 = vadd.f32 %v4966_v3, %v4954_v2  ;;  %v7911_v48 = vld [vmem:[#allocation2 + $0xd60] sm:$0xff]  ;;  %v7925_v2 = vld [vmem:[#allocation2 + $0xdd0] sm:$0xff]  ;;  %v7900_v3 = vld [vmem:[#allocation2 + $0xd08] sm:$0xff] }
 0x196   :  { %5180 = vmatpush.bf16.msra.mxu0 %v7872_v49  ;;  %v308_v20 = vld.sshfl [vmem:[#allocation1 + $0x30] sm:$0xff pattern:$0x73625140] }
 0x197   :  { %5193 = vmatpush.bf16.msra.mxu1 %v7880_v50  ;;  %v7919_v50 = vld [vmem:[#allocation2 + $0xda0] sm:$0xff] }
 0x198   :  { %5206 = vmatpush.bf16.msra.mxu2 %v7888_v51  ;;  %v7927_v51 = vld [vmem:[#allocation2 + $0xde0] sm:$0xff] }
 0x199   :  { %5219 = vmatpush.bf16.msra.mxu3 %v7896_v52 }
 0x19a   :  { %5181 = vmatpush.bf16.msra.mxu0 %v7871_v55  ;;  %v4955_v18 = vpop.f32.mrf.mxu2  ;;  %v7918_v55 = vld [vmem:[#allocation2 + $0xd98] sm:$0xff] }
 0x19b   :  { %5194 = vmatpush.bf16.msra.mxu1 %v7879_v56  ;;  %v4968_v19 = vpop.f32.mrf.mxu3  ;;  %v7926_v56 = vld [vmem:[#allocation2 + $0xdd8] sm:$0xff] }
 0x19c   :  { %5207 = vmatpush.bf16.msra.mxu2 %v7887_v58  ;;  %v7946_v18 = vld [vmem:[#allocation2 + $0xe78] sm:$0xff] }
 0x19d   :  { %5220 = vmatpush.bf16.msra.mxu3 %v7895_v59  ;;  %v306_v19 = vld.sshfl [vmem:[#allocation1 + $0x20] sm:$0xff pattern:$0x73625140] }
 0x19e   :  { %5182 = vmatpush.bf16.msra.mxu0 %v7870_v61 }
 0x19f   :  { %5195 = vmatpush.bf16.msra.mxu1 %v7878_v62  ;;  %v7901_v62 = vld [vmem:[#allocation2 + $0xd10] sm:$0xff] }
 0x1a0   :  { %5208 = vmatpush.bf16.msra.mxu2 %v7886_v63  ;;  %v7909_v63 = vld [vmem:[#allocation2 + $0xd50] sm:$0xff] }
 0x1a1   :  { %5221 = vmatpush.bf16.msra.mxu3 %v7894_v0 }
 0x1a2   :  { %5183 = vmatpush.bf16.msra.mxu0 %v7869_v6  ;;  %v93_v6 = vld [vmem:[%s8395_s0 + $0xf0] sm:$0xff] }
 0x1a3   :  { %5196 = vmatpush.bf16.msra.mxu1 %v7877_v7  ;;  %v109_v7 = vld [vmem:[%s8395_s0 + $0x170] sm:$0xff]  ;;  %311 = vst [vmem:[#allocation1 + $0x1] ss:$4 sm:$0xff] %v93_v6  ;;  %v7939_v6 = vld [vmem:[#allocation2 + $0xe40] sm:$0xff] }
 0x1a4   :  { %5209 = vmatpush.bf16.msra.mxu2 %v7885_v9  ;;  %v7924_v9 = vld [vmem:[#allocation2 + $0xdc8] sm:$0xff]  ;;  %312 = vst [vmem:[#allocation1 + $0x2] ss:$4 sm:$0xff] %v109_v7  ;;  %v7947_v7 = vld [vmem:[#allocation2 + $0xe80] sm:$0xff] }
 0x1a5   :  { %5222 = vmatpush.bf16.msra.mxu3 %v7893_v10 }
 0x1a6   :  { %5184 = vmatpush.bf16.msra.mxu0 %v7868_v11 }
 0x1a7   :  { %5197 = vmatpush.bf16.msra.mxu1 %v7876_v12  ;;  %v125_v12 = vld [vmem:[%s8395_s0 + $0x1f0] sm:$0xff] }
 0x1a8   :  { %5210 = vmatpush.bf16.msra.mxu2 %v7884_v16  ;;  %v7923_v16 = vld [vmem:[#allocation2 + $0xdc0] sm:$0xff]  ;;  %313 = vst [vmem:[#allocation1 + $0x3] ss:$4 sm:$0xff] %v125_v12 }
 0x1a9   :  { %5223 = vmatpush.bf16.msra.mxu3 %v7892_v17  ;;  %v7938_v17 = vld [vmem:[#allocation2 + $0xe38] sm:$0xff] }
 0x1aa   :  { %5185 = vmatpush.bf16.msra.mxu0 %v7867_v21  ;;  %v4979_v45 = vpop.f32.mrf.mxu0  ;;  %v307_v21 = vld.sshfl [vmem:[#allocation1 + $0x28] sm:$0xff pattern:$0x73625140] }
 0x1ab   :  { %5198 = vmatpush.bf16.msra.mxu1 %v7875_v22  ;;  %v4980_v46 = vadd.f32 %v4979_v45, %v8299_v5  ;;  %v4992_v49 = vpop.f32.mrf.mxu1  ;;  %v77_v5 = vld [vmem:[%s8395_s0 + $0x70] sm:$0xff]  ;;  %v309_v22 = vld.sshfl [vmem:[#allocation1 + $0x38] sm:$0xff pattern:$0x73625140]  ;;  %v443_v27 = vpack.c.bf16 %v307_v21, %v307_v21  ;;  %v7934_v45 = vld [vmem:[#allocation2 + $0xe18] sm:$0xff] }
 0x1ac   :  { %5211 = vmatpush.bf16.msra.mxu2 %v7883_v23  ;;  %310 = vst [vmem:[#allocation1] ss:$4 sm:$0xff] %v77_v5  ;;  %v7954_v23 = vld [vmem:[#allocation2 + $0xeb8] sm:$0xff]  ;;  %v445_v28 = vpack.c.bf16 %v309_v22, %v309_v22  ;;  %v7931_v5 = vld [vmem:[#allocation2 + $0xe00] sm:$0xff]  ;;  %v7969_v21 = vld [vmem:[#allocation2 + $0xf30] sm:$0xff] }
 0x1ad   :  { %5224 = vmatpush.bf16.msra.mxu3 %v7891_v24  ;;  %5186 = vmatmul.bf16.vlgmr.msra.gmra.mxu0 %v438_v33  ;;  %v4993_v52 = vadd.f32 %v4992_v49, %v4980_v46  ;;  %v7962_v24 = vld [vmem:[#allocation2 + $0xef8] sm:$0xff]  ;;  %v7936_v33 = vld [vmem:[#allocation2 + $0xe28] sm:$0xff]  ;;  %v7977_v22 = vld [vmem:[#allocation2 + $0xf70] sm:$0xff] }
 0x1ae   :  { %5230 = vmatpush.bf16.msrb.mxu0 %v7906_v25  ;;  %5199 = vmatmul.bf16.vlgmr.msra.gmra.mxu1 %v439_v35  ;;  %v442_v25 = vpack.c.bf16 %v306_v19, %v306_v19  ;;  %v7952_v35 = vld [vmem:[#allocation2 + $0xea8] sm:$0xff]  ;;  %v7942_v46 = vld [vmem:[#allocation2 + $0xe58] sm:$0xff] }
 0x1af   :  { %5243 = vmatpush.bf16.msrb.mxu1 %v7914_v26  ;;  %5212 = vmatmul.bf16.vlgmr.msra.gmra.mxu2 %v440_v34  ;;  %v444_v26 = vpack.c.bf16 %v308_v20, %v308_v20  ;;  %v7944_v34 = vld [vmem:[#allocation2 + $0xe68] sm:$0xff] }
 0x1b0   :  { %5256 = vmatpush.bf16.msrb.mxu2 %v7922_v31  ;;  %5225 = vmatmul.bf16.vlgmr.msra.gmra.mxu3 %v441_v36  ;;  %v7953_v31 = vld [vmem:[#allocation2 + $0xeb0] sm:$0xff]  ;;  %v7960_v36 = vld [vmem:[#allocation2 + $0xee8] sm:$0xff] }
 0x1b1   :  { %5269 = vmatpush.bf16.msrb.mxu3 %v7930_v32  ;;  %v7961_v32 = vld [vmem:[#allocation2 + $0xef0] sm:$0xff] }
 0x1b2   :  { %5231 = vmatpush.bf16.msrb.mxu0 %v7905_v37  ;;  %v5005_v57 = vpop.f32.mrf.mxu2  ;;  %v4981_v60 = vpop.f32.mrf.mxu0 }
 0x1b3   :  { %5244 = vmatpush.bf16.msrb.mxu1 %v7913_v38  ;;  %v5006_v58 = vadd.f32 %v5005_v57, %v4993_v52  ;;  %v5018_v59 = vpop.f32.mrf.mxu3  ;;  %v4994_v0 = vpop.f32.mrf.mxu1  ;;  %v7949_v57 = vld [vmem:[#allocation2 + $0xe90] sm:$0xff]  ;;  %v320_v12 = vld.sshfl [vmem:[#allocation1 + $0x10] sm:$0xff pattern:$0x73625140] }
 0x1b4   :  { %5257 = vmatpush.bf16.msrb.mxu2 %v7921_v39  ;;  %v7935_v39 = vld [vmem:[#allocation2 + $0xe20] sm:$0xff]  ;;  %v78_v60 = vld [vmem:[%s8395_s0 + $0x78] sm:$0xff] }
 0x1b5   :  { %5270 = vmatpush.bf16.msrb.mxu3 %v7929_v40  ;;  %v8314_v61 = vadd.f32 %v5018_v59, %v5006_v58  ;;  %v7943_v40 = vld [vmem:[#allocation2 + $0xe60] sm:$0xff]  ;;  %v7957_v58 = vld [vmem:[#allocation2 + $0xed0] sm:$0xff]  ;;  %v7932_v59 = vld [vmem:[#allocation2 + $0xe08] sm:$0xff]  ;;  %314 = vst [vmem:[#allocation1 + $0x20] ss:$4 sm:$0xff] %v78_v60 }
 0x1b6   :  { %5232 = vmatpush.bf16.msrb.mxu0 %v7904_v41  ;;  %v126_v0 = vld [vmem:[%s8395_s0 + $0x1f8] sm:$0xff]  ;;  %v7987_v60 = vld [vmem:[#allocation2 + $0xfc0] sm:$0xff] }
 0x1b7   :  { %5245 = vmatpush.bf16.msrb.mxu1 %v7912_v42  ;;  %v7951_v42 = vld [vmem:[#allocation2 + $0xea0] sm:$0xff]  ;;  %317 = vst [vmem:[#allocation1 + $0x23] ss:$4 sm:$0xff] %v126_v0 }
 0x1b8   :  { %5258 = vmatpush.bf16.msrb.mxu2 %v7920_v43  ;;  %v7959_v43 = vld [vmem:[#allocation2 + $0xee0] sm:$0xff] }
 0x1b9   :  { %5271 = vmatpush.bf16.msrb.mxu3 %v7928_v44 }
 0x1ba   :  { %5233 = vmatpush.bf16.msrb.mxu0 %v7903_v47  ;;  %v5007_v10 = vpop.f32.mrf.mxu2  ;;  %v7950_v47 = vld [vmem:[#allocation2 + $0xe98] sm:$0xff] }
 0x1bb   :  { %5246 = vmatpush.bf16.msrb.mxu1 %v7911_v48  ;;  %v5020_v11 = vpop.f32.mrf.mxu3  ;;  %v7958_v48 = vld [vmem:[#allocation2 + $0xed8] sm:$0xff] }
 0x1bc   :  { %5259 = vmatpush.bf16.msrb.mxu2 %v7919_v50  ;;  %v7978_v10 = vld [vmem:[#allocation2 + $0xf78] sm:$0xff] }
 0x1bd   :  { %5272 = vmatpush.bf16.msrb.mxu3 %v7927_v51  ;;  %v318_v11 = vld.sshfl [vmem:[#allocation1] sm:$0xff pattern:$0x73625140] }
 0x1be   :  { %5234 = vmatpush.bf16.msrb.mxu0 %v7902_v53 }
 0x1bf   :  { %5247 = vmatpush.bf16.msrb.mxu1 %v7910_v54  ;;  %v7933_v54 = vld [vmem:[#allocation2 + $0xe10] sm:$0xff] }
 0x1c0   :  { %5260 = vmatpush.bf16.msrb.mxu2 %v7918_v55  ;;  %v7941_v55 = vld [vmem:[#allocation2 + $0xe50] sm:$0xff] }
 0x1c1   :  { %5273 = vmatpush.bf16.msrb.mxu3 %v7926_v56 }
 0x1c2   :  { %5235 = vmatpush.bf16.msrb.mxu0 %v7901_v62  ;;  %v7940_v62 = vld [vmem:[#allocation2 + $0xe48] sm:$0xff] }
 0x1c3   :  { %5248 = vmatpush.bf16.msrb.mxu1 %v7909_v63  ;;  %v110_v63 = vld [vmem:[%s8395_s0 + $0x178] sm:$0xff] }
 0x1c4   :  { %5261 = vmatpush.bf16.msrb.mxu2 %v7917_v1  ;;  %v7948_v1 = vld [vmem:[#allocation2 + $0xe88] sm:$0xff]  ;;  %316 = vst [vmem:[#allocation1 + $0x22] ss:$4 sm:$0xff] %v110_v63 }
 0x1c5   :  { %5274 = vmatpush.bf16.msrb.mxu3 %v7925_v2  ;;  %v7956_v2 = vld [vmem:[#allocation2 + $0xec8] sm:$0xff] }
 0x1c6   :  { %5236 = vmatpush.bf16.msrb.mxu0 %v7900_v3 }
 0x1c7   :  { %5249 = vmatpush.bf16.msrb.mxu1 %v7908_v4 }
 0x1c8   :  { %5262 = vmatpush.bf16.msrb.mxu2 %v7916_v8  ;;  %v7955_v8 = vld [vmem:[#allocation2 + $0xec0] sm:$0xff] }
 0x1c9   :  { %5275 = vmatpush.bf16.msrb.mxu3 %v7924_v9  ;;  %v7970_v9 = vld [vmem:[#allocation2 + $0xf38] sm:$0xff] }
 0x1ca   :  { %5237 = vmatpush.bf16.msrb.mxu0 %v7899_v13  ;;  %v5031_v37 = vpop.f32.mrf.mxu0  ;;  %v319_v13 = vld.sshfl [vmem:[#allocation1 + $0x8] sm:$0xff pattern:$0x73625140] }
 0x1cb   :  { %5250 = vmatpush.bf16.msrb.mxu1 %v7907_v14  ;;  %v5032_v38 = vadd.f32 %v5031_v37, %v8314_v61  ;;  %v5044_v41 = vpop.f32.mrf.mxu1  ;;  %v94_v61 = vld [vmem:[%s8395_s0 + $0xf8] sm:$0xff]  ;;  %v447_v19 = vpack.c.bf16 %v319_v13, %v319_v13  ;;  %v7966_v37 = vld [vmem:[#allocation2 + $0xf18] sm:$0xff] }
 0x1cc   :  { %5263 = vmatpush.bf16.msrb.mxu2 %v7915_v15  ;;  %315 = vst [vmem:[#allocation1 + $0x21] ss:$4 sm:$0xff] %v94_v61  ;;  %v321_v14 = vld.sshfl [vmem:[#allocation1 + $0x18] sm:$0xff pattern:$0x73625140]  ;;  %v7986_v15 = vld [vmem:[#allocation2 + $0xfb8] sm:$0xff] }
 0x1cd   :  { %5276 = vmatpush.bf16.msrb.mxu3 %v7923_v16  ;;  %5238 = vmatmul.bf16.vlgmr.msrb.gmra.mxu0 %v442_v25  ;;  %v5045_v44 = vadd.f32 %v5044_v41, %v5032_v38  ;;  %v7994_v16 = vld [vmem:[#allocation2 + $0xff8] sm:$0xff]  ;;  %v449_v20 = vpack.c.bf16 %v321_v14, %v321_v14  ;;  %v7968_v25 = vld [vmem:[#allocation2 + $0xf28] sm:$0xff] }
 0x1ce   :  { %5282 = vmatpush.bf16.msra.mxu0 %v7938_v17  ;;  %5251 = vmatmul.bf16.vlgmr.msrb.gmra.mxu1 %v443_v27  ;;  %v446_v17 = vpack.c.bf16 %v318_v11, %v318_v11  ;;  %v7984_v27 = vld [vmem:[#allocation2 + $0xfa8] sm:$0xff]  ;;  %v7974_v38 = vld [vmem:[#allocation2 + $0xf58] sm:$0xff] }
 0x1cf   :  { %5295 = vmatpush.bf16.msra.mxu1 %v7946_v18  ;;  %5264 = vmatmul.bf16.vlgmr.msrb.gmra.mxu2 %v444_v26  ;;  %v448_v18 = vpack.c.bf16 %v320_v12, %v320_v12  ;;  %v7976_v26 = vld [vmem:[#allocation2 + $0xf68] sm:$0xff] }
 0x1d0   :  { %5308 = vmatpush.bf16.msra.mxu2 %v7954_v23  ;;  %5277 = vmatmul.bf16.vlgmr.msrb.gmra.mxu3 %v445_v28  ;;  %v7985_v23 = vld [vmem:[#allocation2 + $0xfb0] sm:$0xff]  ;;  %v7992_v28 = vld [vmem:[#allocation2 + $0xfe8] sm:$0xff] }
 0x1d1   :  { %5321 = vmatpush.bf16.msra.mxu3 %v7962_v24  ;;  %v7993_v24 = vld [vmem:[#allocation2 + $0xff0] sm:$0xff] }
 0x1d2   :  { %5283 = vmatpush.bf16.msra.mxu0 %v7937_v29  ;;  %v5057_v49 = vpop.f32.mrf.mxu2  ;;  %v5033_v52 = vpop.f32.mrf.mxu0 }
 0x1d3   :  { %5296 = vmatpush.bf16.msra.mxu1 %v7945_v30  ;;  %v5058_v50 = vadd.f32 %v5057_v49, %v5045_v44  ;;  %v5070_v51 = vpop.f32.mrf.mxu3  ;;  %v5046_v56 = vpop.f32.mrf.mxu1  ;;  %v7981_v49 = vld [vmem:[#allocation2 + $0xf90] sm:$0xff]  ;;  %v7972_v52 = vld [vmem:[#allocation2 + $0xf48] sm:$0xff]  ;;  %v322_v61 = vld.sshfl [vmem:[#allocation1 + $0x20] sm:$0xff pattern:$0x73625140] }
 0x1d4   :  { %5309 = vmatpush.bf16.msra.mxu2 %v7953_v31  ;;  %v7967_v31 = vld [vmem:[#allocation2 + $0xf20] sm:$0xff]  ;;  %v324_v63 = vld.sshfl [vmem:[#allocation1 + $0x30] sm:$0xff pattern:$0x73625140] }
 0x1d5   :  { %5322 = vmatpush.bf16.msra.mxu3 %v7961_v32  ;;  %v8329_v53 = vadd.f32 %v5070_v51, %v5058_v50  ;;  %v7975_v32 = vld [vmem:[#allocation2 + $0xf60] sm:$0xff]  ;;  %v7989_v50 = vld [vmem:[#allocation2 + $0xfd0] sm:$0xff]  ;;  %v7964_v51 = vld [vmem:[#allocation2 + $0xf08] sm:$0xff] }
 0x1d6   :  { %5284 = vmatpush.bf16.msra.mxu0 %v7936_v33  ;;  %v7963_v56 = vld [vmem:[#allocation2 + $0xf00] sm:$0xff]  ;;  %v325_v0 = vld.sshfl [vmem:[#allocation1 + $0x38] sm:$0xff pattern:$0x73625140] }
 0x1d7   :  { %5297 = vmatpush.bf16.msra.mxu1 %v7944_v34  ;;  %v7983_v34 = vld [vmem:[#allocation2 + $0xfa0] sm:$0xff] }
 0x1d8   :  { %5310 = vmatpush.bf16.msra.mxu2 %v7952_v35  ;;  %v7991_v35 = vld [vmem:[#allocation2 + $0xfe0] sm:$0xff] }
 0x1d9   :  { %5323 = vmatpush.bf16.msra.mxu3 %v7960_v36 }
 0x1da   :  { %5285 = vmatpush.bf16.msra.mxu0 %v7935_v39  ;;  %v5059_v3 = vpop.f32.mrf.mxu2  ;;  %v7982_v39 = vld [vmem:[#allocation2 + $0xf98] sm:$0xff] }
 0x1db   :  { %5298 = vmatpush.bf16.msra.mxu1 %v7943_v40  ;;  %v5072_v4 = vpop.f32.mrf.mxu3  ;;  %v7990_v40 = vld [vmem:[#allocation2 + $0xfd8] sm:$0xff]  ;;  %v452_v3 = vpack.c.bf16 %v324_v63, %v324_v63 }
 0x1dc   :  { %5311 = vmatpush.bf16.msra.mxu2 %v7951_v42  ;;  %v453_v4 = vpack.c.bf16 %v325_v0, %v325_v0 }
 0x1dd   :  { %5324 = vmatpush.bf16.msra.mxu3 %v7959_v43 }
 0x1de   :  { %5286 = vmatpush.bf16.msra.mxu0 %v7934_v45 }
 0x1df   :  { %5299 = vmatpush.bf16.msra.mxu1 %v7942_v46  ;;  %v7965_v46 = vld [vmem:[#allocation2 + $0xf10] sm:$0xff] }
 0x1e0   :  { %5312 = vmatpush.bf16.msra.mxu2 %v7950_v47  ;;  %v7973_v47 = vld [vmem:[#allocation2 + $0xf50] sm:$0xff] }
 0x1e1   :  { %5325 = vmatpush.bf16.msra.mxu3 %v7958_v48 }
 0x1e2   :  { %5287 = vmatpush.bf16.msra.mxu0 %v7933_v54  ;;  %v7988_v54 = vld [vmem:[#allocation2 + $0xfc8] sm:$0xff] }
 0x1e3   :  { %5300 = vmatpush.bf16.msra.mxu1 %v7941_v55 }
 0x1e4   :  { %5313 = vmatpush.bf16.msra.mxu2 %v7949_v57 }
 0x1e5   :  { %5326 = vmatpush.bf16.msra.mxu3 %v7957_v58  ;;  %v7971_v58 = vld [vmem:[#allocation2 + $0xf40] sm:$0xff] }
 0x1e6   :  { %5288 = vmatpush.bf16.msra.mxu0 %v7932_v59  ;;  %v7979_v59 = vld [vmem:[#allocation2 + $0xf80] sm:$0xff] }
 0x1e7   :  { %5301 = vmatpush.bf16.msra.mxu1 %v7940_v62  ;;  %v323_v62 = vld.sshfl [vmem:[#allocation1 + $0x28] sm:$0xff pattern:$0x73625140] }
 0x1e8   :  { %5314 = vmatpush.bf16.msra.mxu2 %v7948_v1  ;;  %v450_v1 = vpack.c.bf16 %v322_v61, %v322_v61 }
 0x1e9   :  { %5327 = vmatpush.bf16.msra.mxu3 %v7956_v2  ;;  %v451_v2 = vpack.c.bf16 %v323_v62, %v323_v62 }
 0x1ea   :  { %5289 = vmatpush.bf16.msra.mxu0 %v7931_v5  ;;  %v5083_v29 = vpop.f32.mrf.mxu0 }
 0x1eb   :  { %5302 = vmatpush.bf16.msra.mxu1 %v7939_v6  ;;  %v5084_v30 = vadd.f32 %v5083_v29, %v8329_v53  ;;  %v5096_v33 = vpop.f32.mrf.mxu1  ;;  %v7980_v53 = vld [vmem:[#allocation2 + $0xf88] sm:$0xff] }
 0x1ec   :  { %5315 = vmatpush.bf16.msra.mxu2 %v7947_v7 }
 0x1ed   :  { %5328 = vmatpush.bf16.msra.mxu3 %v7955_v8  ;;  %5290 = vmatmul.bf16.vlgmr.msra.gmra.mxu0 %v446_v17  ;;  %v5097_v36 = vadd.f32 %v5096_v33, %v5084_v30  ;;  %v5402_v33 = vld [vmem:[%s8398_s3 + $0x78] sm:$0xff] }
 0x1ee   :  { %5334 = vmatpush.bf16.msrb.mxu0 %v7970_v9  ;;  %5303 = vmatmul.bf16.vlgmr.msra.gmra.mxu1 %v447_v19 }
 0x1ef   :  { %5347 = vmatpush.bf16.msrb.mxu1 %v7978_v10  ;;  %5316 = vmatmul.bf16.vlgmr.msra.gmra.mxu2 %v448_v18 }
 0x1f0   :  { %5360 = vmatpush.bf16.msrb.mxu2 %v7986_v15  ;;  %5329 = vmatmul.bf16.vlgmr.msra.gmra.mxu3 %v449_v20 }
 0x1f1   :  { %5373 = vmatpush.bf16.msrb.mxu3 %v7994_v16 }
 0x1f2   :  { %5335 = vmatpush.bf16.msrb.mxu0 %v7969_v21  ;;  %v5109_v41 = vpop.f32.mrf.mxu2  ;;  %v5085_v44 = vpop.f32.mrf.mxu0 }
 0x1f3   :  { %5348 = vmatpush.bf16.msrb.mxu1 %v7977_v22  ;;  %v5110_v42 = vadd.f32 %v5109_v41, %v5097_v36  ;;  %v5122_v43 = vpop.f32.mrf.mxu3  ;;  %v5098_v48 = vpop.f32.mrf.mxu1  ;;  %v5395_v44 = vld [vmem:[%s8398_s3 + $0x40] sm:$0xff] }
 0x1f4   :  { %5361 = vmatpush.bf16.msrb.mxu2 %v7985_v23 }
 0x1f5   :  { %5374 = vmatpush.bf16.msrb.mxu3 %v7993_v24  ;;  %v5123_v45 = vadd.f32 %v5122_v43, %v5110_v42  ;;  %v5397_v42 = vld [vmem:[%s8398_s3 + $0x50] sm:$0xff]  ;;  %v5396_v43 = vld [vmem:[%s8398_s3 + $0x48] sm:$0xff] }
 0x1f6   :  { %5336 = vmatpush.bf16.msrb.mxu0 %v7968_v25 }
 0x1f7   :  { %5349 = vmatpush.bf16.msrb.mxu1 %v7976_v26 }
 0x1f8   :  { %5362 = vmatpush.bf16.msrb.mxu2 %v7984_v27 }
 0x1f9   :  { %5375 = vmatpush.bf16.msrb.mxu3 %v7992_v28 }
 0x1fa   :  { %5337 = vmatpush.bf16.msrb.mxu0 %v7967_v31  ;;  %v5111_v55 = vpop.f32.mrf.mxu2 }
 0x1fb   :  { %5350 = vmatpush.bf16.msrb.mxu1 %v7975_v32  ;;  %v5124_v57 = vpop.f32.mrf.mxu3 }
 0x1fc   :  { %5363 = vmatpush.bf16.msrb.mxu2 %v7983_v34  ;;  %v5401_v34 = vld [vmem:[%s8398_s3 + $0x70] sm:$0xff] }
 0x1fd   :  { %5376 = vmatpush.bf16.msrb.mxu3 %v7991_v35 }
 0x1fe   :  { %5338 = vmatpush.bf16.msrb.mxu0 %v7966_v37  ;;  %v5400_v37 = vld [vmem:[%s8398_s3 + $0x68] sm:$0xff] }
 0x1ff   :  { %5351 = vmatpush.bf16.msrb.mxu1 %v7974_v38  ;;  %v5399_v38 = vld [vmem:[%s8398_s3 + $0x60] sm:$0xff] }
 0x200   :  { %5364 = vmatpush.bf16.msrb.mxu2 %v7982_v39  ;;  %v5398_v39 = vld [vmem:[%s8398_s3 + $0x58] sm:$0xff] }
 0x201   :  { %5377 = vmatpush.bf16.msrb.mxu3 %v7990_v40 }
 0x202   :  { %5339 = vmatpush.bf16.msrb.mxu0 %v7965_v46  ;;  %v5393_v46 = vld [vmem:[%s8398_s3 + $0x30] sm:$0xff] }
 0x203   :  { %5352 = vmatpush.bf16.msrb.mxu1 %v7973_v47  ;;  %v5392_v47 = vld [vmem:[%s8398_s3 + $0x28] sm:$0xff] }
 0x204   :  { %5365 = vmatpush.bf16.msrb.mxu2 %v7981_v49  ;;  %v5391_v49 = vld [vmem:[%s8398_s3 + $0x20] sm:$0xff] }
 0x205   :  { %5378 = vmatpush.bf16.msrb.mxu3 %v7989_v50 }
 0x206   :  { %5340 = vmatpush.bf16.msrb.mxu0 %v7964_v51  ;;  %v5390_v51 = vld [vmem:[%s8398_s3 + $0x18] sm:$0xff] }
 0x207   :  { %5353 = vmatpush.bf16.msrb.mxu1 %v7972_v52  ;;  %v5389_v52 = vld [vmem:[%s8398_s3 + $0x10] sm:$0xff] }
 0x208   :  { %5366 = vmatpush.bf16.msrb.mxu2 %v7980_v53 }
 0x209   :  { %5379 = vmatpush.bf16.msrb.mxu3 %v7988_v54 }
 0x20a   :  { %5341 = vmatpush.bf16.msrb.mxu0 %v7963_v56  ;;  %v5135_v5 = vpop.f32.mrf.mxu0  ;;  %v5388_v56 = vld [vmem:[%s8398_s3 + $0x8] sm:$0xff] }
 0x20b   :  { %5354 = vmatpush.bf16.msrb.mxu1 %v7971_v58  ;;  %v5136_v6 = vadd.f32 %v5135_v5, %v5123_v45  ;;  %v5148_v7 = vpop.f32.mrf.mxu1  ;;  %v5394_v45 = vld [vmem:[%s8398_s3 + $0x38] sm:$0xff] }
 0x20c   :  { %5367 = vmatpush.bf16.msrb.mxu2 %v7979_v59  ;;  %v5387_v59 = vld [vmem:[%s8398_s3] sm:$0xff] }
 0x20d   :  { %5380 = vmatpush.bf16.msrb.mxu3 %v7987_v60  ;;  %5342 = vmatmul.bf16.vlgmr.msrb.gmra.mxu0 %v450_v1  ;;  %v5149_v8 = vadd.f32 %v5148_v7, %v5136_v6 }
 0x20e   :  { %5355 = vmatmul.bf16.vlgmr.msrb.gmra.mxu1 %v451_v2  ;;  %5407 = vmatpush.msra.mxu0 %v5402_v33 }
 0x20f   :  { %5368 = vmatmul.bf16.vlgmr.msrb.gmra.mxu2 %v452_v3 }
 0x210   :  { %5381 = vmatmul.bf16.vlgmr.msrb.gmra.mxu3 %v453_v4  ;;  %5408 = vmatpush.msra.mxu0 %v5401_v34 }
 0x212   :  { %v5161_v9 = vpop.f32.mrf.mxu2  ;;  %v5137_v12 = vpop.f32.mrf.mxu0  ;;  %5409 = vmatpush.msra.mxu0 %v5400_v37 }
 0x213   :  { %v5162_v10 = vadd.f32 %v5161_v9, %v5149_v8  ;;  %v5174_v11 = vpop.f32.mrf.mxu3  ;;  %v5150_v14 = vpop.f32.mrf.mxu1 }
 0x214   :  { %5410 = vmatpush.msra.mxu0 %v5399_v38 }
 0x215   :  { %v5175_v13 = vadd.f32 %v5174_v11, %v5162_v10 }
 0x216   :  { %5411 = vmatpush.msra.mxu0 %v5398_v39 }
 0x218   :  { %5412 = vmatpush.msra.mxu0 %v5397_v42 }
 0x21a   :  { %v5163_v15 = vpop.f32.mrf.mxu2  ;;  %5413 = vmatpush.msra.mxu0 %v5396_v43 }
 0x21b   :  { %v5176_v16 = vpop.f32.mrf.mxu3 }
 0x21c   :  { %5414 = vmatpush.msra.mxu0 %v5395_v44 }
 0x21e   :  { %5415 = vmatpush.msra.mxu0 %v5394_v45 }
 0x220   :  { %5416 = vmatpush.msra.mxu0 %v5393_v46 }
 0x222   :  { %5417 = vmatpush.msra.mxu0 %v5392_v47 }
 0x224   :  { %5418 = vmatpush.msra.mxu0 %v5391_v49 }
 0x226   :  { %5419 = vmatpush.msra.mxu0 %v5390_v51 }
 0x228   :  { %5420 = vmatpush.msra.mxu0 %v5389_v52 }
 0x22a   :  { %v5187_v17 = vpop.f32.mrf.mxu0  ;;  %5421 = vmatpush.msra.mxu0 %v5388_v56 }
 0x22b   :  { %v5188_v18 = vadd.f32 %v5187_v17, %v5175_v13  ;;  %v5200_v19 = vpop.f32.mrf.mxu1 }
 0x22c   :  { %5422 = vmatpush.msra.mxu0 %v5387_v59 }
 0x22d   :  { %v5201_v20 = vadd.f32 %v5200_v19, %v5188_v18  ;;  %v8001_v18 = vld [vmem:[#allocation6] ss:$0 sm:$0xff] }
 0x232   :  { %v5213_v21 = vpop.f32.mrf.mxu2  ;;  %v5189_v24 = vpop.f32.mrf.mxu0 }
 0x233   :  { %v5214_v22 = vadd.f32 %v5213_v21, %v5201_v20  ;;  %v5226_v23 = vpop.f32.mrf.mxu3  ;;  %v5202_v26 = vpop.f32.mrf.mxu1 }
 0x235   :  { %v5227_v25 = vadd.f32 %v5226_v23, %v5214_v22 }
 0x23a   :  { %v5215_v27 = vpop.f32.mrf.mxu2 }
 0x23b   :  { %v5228_v28 = vpop.f32.mrf.mxu3 }
 0x24a   :  { %v5239_v29 = vpop.f32.mrf.mxu0 }
 0x24b   :  { %v5252_v30 = vpop.f32.mrf.mxu1  ;;  %v5240_v54 = vadd.f32 %v5239_v29, %v5227_v25 }
 0x24d   :  { %v5253_v60 = vadd.f32 %v5252_v30, %v5240_v54 }
 0x252   :  { %v5265_v31 = vpop.f32.mrf.mxu2  ;;  %v5241_v35 = vpop.f32.mrf.mxu0 }
 0x253   :  { %v5278_v32 = vpop.f32.mrf.mxu3  ;;  %v5254_v36 = vpop.f32.mrf.mxu1  ;;  %v5266_v61 = vadd.f32 %v5265_v31, %v5253_v60 }
 0x255   :  { %v5279_v0 = vadd.f32 %v5278_v32, %v5266_v61 }
 0x25a   :  { %v5267_v40 = vpop.f32.mrf.mxu2 }
 0x25b   :  { %v5280_v41 = vpop.f32.mrf.mxu3 }
 0x26a   :  { %v5291_v48 = vpop.f32.mrf.mxu0 }
 0x26b   :  { %v5304_v50 = vpop.f32.mrf.mxu1  ;;  %v5292_v1 = vadd.f32 %v5291_v48, %v5279_v0 }
 0x26d   :  { %v5305_v2 = vadd.f32 %v5304_v50, %v5292_v1 }
 0x272   :  { %v5317_v53 = vpop.f32.mrf.mxu2  ;;  %v5293_v57 = vpop.f32.mrf.mxu0 }
 0x273   :  { %v5330_v55 = vpop.f32.mrf.mxu3  ;;  %v5306_v58 = vpop.f32.mrf.mxu1  ;;  %v5318_v3 = vadd.f32 %v5317_v53, %v5305_v2 }
 0x275   :  { %v5331_v4 = vadd.f32 %v5330_v55, %v5318_v3 }
 0x27a   :  { %v5319_v62 = vpop.f32.mrf.mxu2 }
 0x27b   :  { %v5332_v63 = vpop.f32.mrf.mxu3 }
 0x28a   :  { %v5343_v5 = vpop.f32.mrf.mxu0 }
 0x28b   :  { %v5356_v6 = vpop.f32.mrf.mxu1  ;;  %v5344_v7 = vadd.f32 %v5343_v5, %v5331_v4 }
 0x28d   :  { %v5357_v8 = vadd.f32 %v5356_v6, %v5344_v7 }
 0x292   :  { %v5369_v9 = vpop.f32.mrf.mxu2  ;;  %v5345_v12 = vpop.f32.mrf.mxu0 }
 0x293   :  { %v5382_v10 = vpop.f32.mrf.mxu3  ;;  %v5370_v11 = vadd.f32 %v5369_v9, %v5357_v8  ;;  %v5358_v13 = vpop.f32.mrf.mxu1 }
 0x295   :  { %v5383_v14 = vadd.f32 %v5382_v10, %v5370_v11 }
 0x297   :  { %v5386_v15 = vmax.f32 %v5383_v14, 0.0 }
 0x299   :  { %5423 = vmatmul.f32.vlgmr.msra.gmra.mxu0 %v5386_v15 }
 0x29a   :  { %v5371_v16 = vpop.f32.mrf.mxu2 }
 0x29b   :  { %v5384_v17 = vpop.f32.mrf.mxu3 }
 0x316   :  { %v5424_v19 = vpop.f32.mrf.mxu0 }
 0x317   :  { %v5425_v20 = vadd.f32 %v8001_v18, %v5424_v19 }
 0x319   :  { %5428 = vst.msk [vmem:[%s8400_s5] sm:$0xff] %vm5427_vm0, %v5425_v20 }
 0x31a   :  { %5433 = vsyncpa [#allocation3], 1 }
 0x31b   :  { %5434 = vsyncpa [#allocation5], 1 }

</bundles_post_ra>
